<compile_context>
chip_gen: v5e
topology: v5e:2x2
jax: 0.10.0
libtpu: 0.0.40
codegen_flags: <defaults>
</compile_context>

<pallas_src>
import jax
import jax.numpy as jnp
from jax.experimental import pallas as pl
from jax.experimental.pallas import tpu as pltpu

INPUT_SIZE = 16    # conv1 in-channels (forward views input to (-1, 16, 4, 4))
OUTPUT_SIZE = 4


# ----------------------------------------------------------------------------
# Fused kernel: 3 dense "conv" matmuls + relu + fc, all 2-D and lane-dense.
# Weights are bf16; matmuls accumulate in f32; bias-add/relu in f32.
# ----------------------------------------------------------------------------
def net_kernel(x_ref, w1_ref, b1_ref, w2_ref, b2_ref, w3_ref, b3_ref,
               wf_ref, bf_ref, y_ref):
    x = x_ref[...].astype(jnp.bfloat16)                                # (tb, 256)
    h1 = jnp.dot(x, w1_ref[...],
                 preferred_element_type=jnp.float32) + b1_ref[...]     # (tb, 576)
    h1 = jnp.maximum(h1, 0.0).astype(jnp.bfloat16)
    h2 = jnp.dot(h1, w2_ref[...],
                 preferred_element_type=jnp.float32) + b2_ref[...]     # (tb, 512)
    h2 = jnp.maximum(h2, 0.0).astype(jnp.bfloat16)
    h3 = jnp.dot(h2, w3_ref[...],
                 preferred_element_type=jnp.float32) + b3_ref[...]     # (tb, 32)
    h3 = jnp.maximum(h3, 0.0).astype(jnp.bfloat16)
    y_ref[...] = (jnp.dot(h3, wf_ref[...],
                          preferred_element_type=jnp.float32)
                  + bf_ref[...])                                       # (tb, 128)


# ----------------------------------------------------------------------------
# Parameter initialization (PyTorch layouts) and one-time Toeplitz lowering.
# ----------------------------------------------------------------------------
def init_torch_params(key, output_size=OUTPUT_SIZE):
    """PyTorch-layout params: conv weights OIHW, biases (Cout,), fc (out,in)."""
    ks = jax.random.split(key, 8)

    def conv_param(kw_key, kb_key, cin, cout):
        bound = 1.0 / jnp.sqrt(cin * 2.0 * 2.0)
        w = jax.random.uniform(kw_key, (cout, cin, 2, 2), jnp.float32, -bound, bound)
        b = jax.random.uniform(kb_key, (cout,), jnp.float32, -bound, bound)
        return w, b

    w1, b1 = conv_param(ks[0], ks[1], 16, 64)
    w2, b2 = conv_param(ks[2], ks[3], 64, 128)
    w3, b3 = conv_param(ks[4], ks[5], 128, 32)
    bound = 1.0 / jnp.sqrt(32.0)
    wf = jax.random.uniform(ks[6], (output_size, 32), jnp.float32, -bound, bound)
    bf = jax.random.uniform(ks[7], (output_size,), jnp.float32, -bound, bound)
    return (w1, b1, w2, b2, w3, b3, wf, bf)


def _conv2x2_to_dense(w_oihw, h_in, w_in, in_layout):
    """Unroll a VALID 2x2 conv into a dense (Fin, Fout) matrix.

    in_layout: 'CHW'  -> fin = ci*(h*w) + ih*w + iw   (torch NCHW flat)
               'HWC'  -> fin = (ih*w + iw)*cin + ci   (previous layer's output)
    Output layout is always HWC-flat: fout = (oh*wo + ow)*cout + co.
    """
    cout, cin = int(w_oihw.shape[0]), int(w_oihw.shape[1])
    ho, wo = h_in - 1, w_in - 1
    if in_layout == "CHW":
        fin_size = cin * h_in * w_in
        def fin_idx(ci, ih, iw):
            return ci * (h_in * w_in) + ih * w_in + iw
    else:  # HWC
        fin_size = h_in * w_in * cin
        def fin_idx(ci, ih, iw):
            return (ih * w_in + iw) * cin + ci
    fout_size = ho * wo * cout

    dense = jnp.zeros((fin_size, fout_size), jnp.float32)
    ci = jnp.arange(cin)
    co = jnp.arange(cout)
    for oh in range(ho):
        for ow in range(wo):
            fout = (oh * wo + ow) * cout + co                 # (cout,)
            for kh in range(2):
                for kw in range(2):
                    fin = fin_idx(ci, oh + kh, ow + kw)       # (cin,)
                    blk = w_oihw[:, :, kh, kw].T              # (cin, cout)
                    dense = dense.at[fin[:, None], fout[None, :]].set(blk)
    return dense


def prepare_dense_params(torch_params):
    """One-time lowering of torch-layout params to the kernel's dense params.

    Weights go to bf16 (MXU-native); biases stay f32 (added post-accumulate).
    fc weight/bias are zero-padded to lane width 128 for lane-dense stores.
    """
    (w1, b1, w2, b2, w3, b3, wf, bf) = torch_params
    output_size = int(wf.shape[0])
    out_pad = max(128, -(-output_size // 128) * 128)

    w1d = _conv2x2_to_dense(w1, 4, 4, "CHW").astype(jnp.bfloat16)   # (256, 576)
    w2d = _conv2x2_to_dense(w2, 3, 3, "HWC").astype(jnp.bfloat16)   # (576, 512)
    w3d = _conv2x2_to_dense(w3, 2, 2, "HWC").astype(jnp.bfloat16)   # (512, 32)
    b1d = jnp.tile(b1, 9).reshape(1, -1)                            # (1, 576) f32
    b2d = jnp.tile(b2, 4).reshape(1, -1)                            # (1, 512) f32
    b3d = b3.reshape(1, -1)                                         # (1, 32)  f32
    wfd = (jnp.zeros((32, out_pad), jnp.float32)
           .at[:, :output_size].set(wf.T)).astype(jnp.bfloat16)     # (32, 128)
    bfd = jnp.zeros((1, out_pad), jnp.float32).at[:, :output_size].set(bf)
    return (w1d, b1d, w2d, b2d, w3d, b3d, wfd, bfd)


# ----------------------------------------------------------------------------
# Pallas wrapper
# ----------------------------------------------------------------------------
def _choose_tile(batch):
    """Batch tile: full-extent for tiny batches, else a multiple of 32,
    capped at 1024, keeping >= 2 grid steps (v7x 2-TC split)."""
    if batch <= 32:
        return batch                       # single full-extent tile (tb == B)
    half = -(-batch // 2)                  # >= 2 grid steps
    tb = -(-half // 32) * 32               # round up to a multiple of 32
    return min(1024, tb)


def net_forward(x, dense_params, output_size=OUTPUT_SIZE, tb=None):
    (w1, b1, w2, b2, w3, b3, wf, bf) = dense_params
    out_pad = int(wf.shape[1])
    # Matches torch x.view(-1, 16, 4, 4): the flat (B, 256) NCHW ordering is
    # consumed directly; the layout permutation lives in w1's row order.
    x = x.reshape(-1, 16 * 4 * 4)
    B = x.shape[0]

    if tb is None:
        tb = _choose_tile(B)
    grid = (pl.cdiv(B, tb),)               # partial tail block handled by Pallas

    in_specs = [
        pl.BlockSpec((tb, 256), lambda i: (i, 0)),
        pl.BlockSpec((256, 576), lambda i: (0, 0)),
        pl.BlockSpec((1, 576),   lambda i: (0, 0)),
        pl.BlockSpec((576, 512), lambda i: (0, 0)),
        pl.BlockSpec((1, 512),   lambda i: (0, 0)),
        pl.BlockSpec((512, 32),  lambda i: (0, 0)),
        pl.BlockSpec((1, 32),    lambda i: (0, 0)),
        pl.BlockSpec((32, out_pad), lambda i: (0, 0)),
        pl.BlockSpec((1, out_pad),  lambda i: (0, 0)),
    ]
    out_specs = pl.BlockSpec((tb, out_pad), lambda i: (i, 0))

    flops = 2 * B * (256 * 576 + 576 * 512 + 512 * 32 + 32 * out_pad)
    weight_bytes = sum(int(a.size) * a.dtype.itemsize
                       for a in (w1, b1, w2, b2, w3, b3, wf, bf))
    bytes_accessed = (B * 256 * x.dtype.itemsize + B * out_pad * 4 + weight_bytes)

    y = pl.pallas_call(
        net_kernel,
        out_shape=jax.ShapeDtypeStruct((B, out_pad), jnp.float32),
        grid=grid,
        in_specs=in_specs,
        out_specs=out_specs,
        compiler_params=pltpu.CompilerParams(
            dimension_semantics=("parallel",),
            vmem_limit_bytes=32 * 1024 * 1024),
        cost_estimate=pl.CostEstimate(flops=flops, transcendentals=0,
                                      bytes_accessed=bytes_accessed),
    )(x, w1, b1, w2, b2, w3, b3, wf, bf)
    return y[:, :output_size]


# ----------------------------------------------------------------------------
# Pure-JAX reference (NCHW convs, torch-layout params, f32)
# ----------------------------------------------------------------------------
def ref_forward(x, torch_params, output_size=OUTPUT_SIZE):
    (w1, b1, w2, b2, w3, b3, wf, bf) = torch_params
    x = x.reshape(-1, 16, 4, 4).astype(jnp.float32)

    def conv(h, w, b):
        y = jax.lax.conv_general_dilated(
            h, w, (1, 1), "VALID",
            dimension_numbers=("NCHW", "OIHW", "NCHW"))
        return jax.nn.relu(y + b.reshape(1, -1, 1, 1))

    h = conv(x, w1, b1)
    h = conv(h, w2, b2)
    h = conv(h, w3, b3)
    h = h.reshape(-1, 32)
    return h @ wf.T + bf.reshape(1, -1)


if __name__ == "__main__":
    key = jax.random.PRNGKey(0)
    k_x, k_p = jax.random.split(key)

    B = 16
    # Natural image-shaped input; the module .view()s it to (-1, 16, 4, 4).
    x = jax.random.normal(k_x, (B, 16, 4, 4), dtype=jnp.float32)

    torch_params = init_torch_params(k_p, OUTPUT_SIZE)
    dense_params = prepare_dense_params(torch_params)   # one-time lowering

    y = net_forward(x, dense_params, OUTPUT_SIZE)
    y = jax.block_until_ready(y)

    y_ref = jax.block_until_ready(ref_forward(x, torch_params, OUTPUT_SIZE))
    assert y.shape == (B, OUTPUT_SIZE)
    # bf16 matmuls vs f32 reference: loosened tolerance.
    assert jnp.allclose(y, y_ref, atol=5e-2, rtol=5e-2), "mismatch vs reference"

    print("KERNEL_OK")
</pallas_src>

<mosaic_0001>
module attributes {stable_mosaic.version = 11 : i64} {
  func.func @net_kernel(%arg0: i32, %arg1: memref<16x256xf32, #tpu.memory_space<vmem>>, %arg2: memref<256x576xbf16, #tpu.memory_space<vmem>>, %arg3: memref<1x576xf32, #tpu.memory_space<vmem>>, %arg4: memref<576x512xbf16, #tpu.memory_space<vmem>>, %arg5: memref<1x512xf32, #tpu.memory_space<vmem>>, %arg6: memref<512x32xbf16, #tpu.memory_space<vmem>>, %arg7: memref<1x32xf32, #tpu.memory_space<vmem>>, %arg8: memref<32x128xbf16, #tpu.memory_space<vmem>>, %arg9: memref<1x128xf32, #tpu.memory_space<vmem>>, %arg10: memref<16x128xf32, #tpu.memory_space<vmem>>) attributes {dimension_semantics = [#tpu.dimension_semantics<parallel>], iteration_bounds = array<i64: 1>, scalar_prefetch = 0 : i64, scratch_operands = 0 : i64, tpu.core_type = #tpu.core_type<tc>, window_params = [{transform_indices = @transform_0, window_bounds = array<i64: 16, 256>}, {pipeline_mode = #tpu.pipeline_mode<synchronous>, transform_indices = @transform_1, window_bounds = array<i64: 256, 576>}, {pipeline_mode = #tpu.pipeline_mode<synchronous>, transform_indices = @transform_2, window_bounds = array<i64: 1, 576>}, {pipeline_mode = #tpu.pipeline_mode<synchronous>, transform_indices = @transform_3, window_bounds = array<i64: 576, 512>}, {pipeline_mode = #tpu.pipeline_mode<synchronous>, transform_indices = @transform_4, window_bounds = array<i64: 1, 512>}, {pipeline_mode = #tpu.pipeline_mode<synchronous>, transform_indices = @transform_5, window_bounds = array<i64: 512, 32>}, {pipeline_mode = #tpu.pipeline_mode<synchronous>, transform_indices = @transform_6, window_bounds = array<i64: 1, 32>}, {pipeline_mode = #tpu.pipeline_mode<synchronous>, transform_indices = @transform_7, window_bounds = array<i64: 32, 128>}, {pipeline_mode = #tpu.pipeline_mode<synchronous>, transform_indices = @transform_8, window_bounds = array<i64: 1, 128>}, {transform_indices = @transform_9, window_bounds = array<i64: 16, 128>}]} {
    %c0 = arith.constant 0 : index
    %c0_0 = arith.constant 0 : index
    %0 = vector.load %arg1[%c0, %c0_0] : memref<16x256xf32, #tpu.memory_space<vmem>>, vector<16x256xf32>
    %1 = arith.truncf %0 : vector<16x256xf32> to vector<16x256xbf16>
    %c0_1 = arith.constant 0 : index
    %c0_2 = arith.constant 0 : index
    %2 = vector.load %arg2[%c0_1, %c0_2] : memref<256x576xbf16, #tpu.memory_space<vmem>>, vector<256x576xbf16>
    %cst = arith.constant dense<0.000000e+00> : vector<16x576xf32>
    %3 = tpu.matmul %1, %2, %cst {dimension_numbers = #tpu.dot_dimension_numbers<[1], [0], [0], [1], [0, 0, 1, 1], [], []>} : vector<16x256xbf16>, vector<256x576xbf16>, vector<16x576xf32> -> vector<16x576xf32>
    %c0_3 = arith.constant 0 : index
    %c0_4 = arith.constant 0 : index
    %4 = vector.load %arg3[%c0_3, %c0_4] : memref<1x576xf32, #tpu.memory_space<vmem>>, vector<1x576xf32>
    %5 = vector.broadcast %4 : vector<1x576xf32> to vector<16x576xf32>
    %6 = arith.addf %3, %5 : vector<16x576xf32>
    %cst_5 = arith.constant 0.000000e+00 : f32
    %7 = vector.broadcast %cst_5 : f32 to vector<16x576xf32>
    %8 = arith.maximumf %6, %7 : vector<16x576xf32>
    %9 = arith.truncf %8 : vector<16x576xf32> to vector<16x576xbf16>
    %c0_6 = arith.constant 0 : index
    %c0_7 = arith.constant 0 : index
    %10 = vector.load %arg4[%c0_6, %c0_7] : memref<576x512xbf16, #tpu.memory_space<vmem>>, vector<576x512xbf16>
    %cst_8 = arith.constant dense<0.000000e+00> : vector<16x512xf32>
    %11 = tpu.matmul %9, %10, %cst_8 {dimension_numbers = #tpu.dot_dimension_numbers<[1], [0], [0], [1], [0, 0, 1, 1], [], []>} : vector<16x576xbf16>, vector<576x512xbf16>, vector<16x512xf32> -> vector<16x512xf32>
    %c0_9 = arith.constant 0 : index
    %c0_10 = arith.constant 0 : index
    %12 = vector.load %arg5[%c0_9, %c0_10] : memref<1x512xf32, #tpu.memory_space<vmem>>, vector<1x512xf32>
    %13 = vector.broadcast %12 : vector<1x512xf32> to vector<16x512xf32>
    %14 = arith.addf %11, %13 : vector<16x512xf32>
    %cst_11 = arith.constant 0.000000e+00 : f32
    %15 = vector.broadcast %cst_11 : f32 to vector<16x512xf32>
    %16 = arith.maximumf %14, %15 : vector<16x512xf32>
    %17 = arith.truncf %16 : vector<16x512xf32> to vector<16x512xbf16>
    %c0_12 = arith.constant 0 : index
    %c0_13 = arith.constant 0 : index
    %18 = vector.load %arg6[%c0_12, %c0_13] : memref<512x32xbf16, #tpu.memory_space<vmem>>, vector<512x32xbf16>
    %cst_14 = arith.constant dense<0.000000e+00> : vector<16x32xf32>
    %19 = tpu.matmul %17, %18, %cst_14 {dimension_numbers = #tpu.dot_dimension_numbers<[1], [0], [0], [1], [0, 0, 1, 1], [], []>} : vector<16x512xbf16>, vector<512x32xbf16>, vector<16x32xf32> -> vector<16x32xf32>
    %c0_15 = arith.constant 0 : index
    %c0_16 = arith.constant 0 : index
    %20 = vector.load %arg7[%c0_15, %c0_16] : memref<1x32xf32, #tpu.memory_space<vmem>>, vector<1x32xf32>
    %21 = vector.broadcast %20 : vector<1x32xf32> to vector<16x32xf32>
    %22 = arith.addf %19, %21 : vector<16x32xf32>
    %cst_17 = arith.constant 0.000000e+00 : f32
    %23 = vector.broadcast %cst_17 : f32 to vector<16x32xf32>
    %24 = arith.maximumf %22, %23 : vector<16x32xf32>
    %25 = arith.truncf %24 : vector<16x32xf32> to vector<16x32xbf16>
    %c0_18 = arith.constant 0 : index
    %c0_19 = arith.constant 0 : index
    %26 = vector.load %arg8[%c0_18, %c0_19] : memref<32x128xbf16, #tpu.memory_space<vmem>>, vector<32x128xbf16>
    %cst_20 = arith.constant dense<0.000000e+00> : vector<16x128xf32>
    %27 = tpu.matmul %25, %26, %cst_20 {dimension_numbers = #tpu.dot_dimension_numbers<[1], [0], [0], [1], [0, 0, 1, 1], [], []>} : vector<16x32xbf16>, vector<32x128xbf16>, vector<16x128xf32> -> vector<16x128xf32>
    %c0_21 = arith.constant 0 : index
    %c0_22 = arith.constant 0 : index
    %28 = vector.load %arg9[%c0_21, %c0_22] : memref<1x128xf32, #tpu.memory_space<vmem>>, vector<1x128xf32>
    %29 = vector.broadcast %28 : vector<1x128xf32> to vector<16x128xf32>
    %30 = arith.addf %27, %29 : vector<16x128xf32>
    %c0_23 = arith.constant 0 : index
    %c0_24 = arith.constant 0 : index
    %31 = vector.load %arg10[%c0_23, %c0_24] : memref<16x128xf32, #tpu.memory_space<vmem>>, vector<16x128xf32>
    tpu.vector_store %arg10[%c0_23, %c0_24], %30 {strides = array<i32>} : memref<16x128xf32, #tpu.memory_space<vmem>>, vector<16x128xf32>,
    return
  }
  func.func @transform_0(%arg0: i32) -> (i32, i32) {
    %c0_i32 = arith.constant 0 : i32
    %c0_i32_0 = arith.constant 0 : i32
    return %arg0, %c0_i32 : i32, i32
  }
  func.func @transform_1(%arg0: i32) -> (i32, i32) {
    %c0_i32 = arith.constant 0 : i32
    %c0_i32_0 = arith.constant 0 : i32
    %c0_i32_1 = arith.constant 0 : i32
    return %c0_i32, %c0_i32_0 : i32, i32
  }
  func.func @transform_2(%arg0: i32) -> (i32, i32) {
    %c0_i32 = arith.constant 0 : i32
    %c0_i32_0 = arith.constant 0 : i32
    %c0_i32_1 = arith.constant 0 : i32
    return %c0_i32, %c0_i32_0 : i32, i32
  }
  func.func @transform_3(%arg0: i32) -> (i32, i32) {
    %c0_i32 = arith.constant 0 : i32
    %c0_i32_0 = arith.constant 0 : i32
    %c0_i32_1 = arith.constant 0 : i32
    return %c0_i32, %c0_i32_0 : i32, i32
  }
  func.func @transform_4(%arg0: i32) -> (i32, i32) {
    %c0_i32 = arith.constant 0 : i32
    %c0_i32_0 = arith.constant 0 : i32
    %c0_i32_1 = arith.constant 0 : i32
    return %c0_i32, %c0_i32_0 : i32, i32
  }
  func.func @transform_5(%arg0: i32) -> (i32, i32) {
    %c0_i32 = arith.constant 0 : i32
    %c0_i32_0 = arith.constant 0 : i32
    %c0_i32_1 = arith.constant 0 : i32
    return %c0_i32, %c0_i32_0 : i32, i32
  }
  func.func @transform_6(%arg0: i32) -> (i32, i32) {
    %c0_i32 = arith.constant 0 : i32
    %c0_i32_0 = arith.constant 0 : i32
    %c0_i32_1 = arith.constant 0 : i32
    return %c0_i32, %c0_i32_0 : i32, i32
  }
  func.func @transform_7(%arg0: i32) -> (i32, i32) {
    %c0_i32 = arith.constant 0 : i32
    %c0_i32_0 = arith.constant 0 : i32
    %c0_i32_1 = arith.constant 0 : i32
    return %c0_i32, %c0_i32_0 : i32, i32
  }
  func.func @transform_8(%arg0: i32) -> (i32, i32) {
    %c0_i32 = arith.constant 0 : i32
    %c0_i32_0 = arith.constant 0 : i32
    %c0_i32_1 = arith.constant 0 : i32
    return %c0_i32, %c0_i32_0 : i32, i32
  }
  func.func @transform_9(%arg0: i32) -> (i32, i32) {
    %c0_i32 = arith.constant 0 : i32
    %c0_i32_0 = arith.constant 0 : i32
    return %arg0, %c0_i32 : i32, i32
  }
}

</mosaic_0001>

<bundles_post_ra>
// kernel: tpu_custom_call.1
= control target key start
LH: loop header
LB: loop body
LE: loop exit
PB: predicated region body
PF: predicated region fallthrough
CT: control target
= control target key end

     0   :  { %s5179_s0 = inlined_call_operand.vmem [shape: f32[16,256], index: 0, kind: input, shape index: {}]   ;;  %s5180_s1 = inlined_call_operand.vmem [shape: bf16[256,576], index: 1, kind: input, shape index: {}]   ;;  %s5181_s2 = inlined_call_operand.vmem [shape: f32[1,576], index: 2, kind: input, shape index: {}]   ;;  %s5182_s3 = inlined_call_operand.vmem [shape: bf16[576,512], index: 3, kind: input, shape index: {}]   ;;  %s5183_s4 = inlined_call_operand.vmem [shape: f32[1,512], index: 4, kind: input, shape index: {}]   ;;  %s5184_s5 = inlined_call_operand.vmem [shape: bf16[512,32], index: 5, kind: input, shape index: {}]   ;;  %s5185_s6 = inlined_call_operand.vmem [shape: f32[1,32], index: 6, kind: input, shape index: {}]   ;;  %s5186_s7 = inlined_call_operand.vmem [shape: bf16[32,128], index: 7, kind: input, shape index: {}]   ;;  %s5187_s8 = inlined_call_operand.vmem [shape: f32[1,128], index: 8, kind: input, shape index: {}]   ;;  %s5188_s9 = inlined_call_operand.hbm [shape: f32[16,128], index: 9, kind: output, shape index: {}]  }
   0x1   :  { %v2408_v0 = vld [vmem:[%s5180_s1 + $0x118] sm:$0xf]  ;;  %v3340_v1 = vld [vmem:[%s5180_s1 + $0x128] sm:$0xf0]  ;;  %v3338_v5 = vld [vmem:[%s5180_s1 + $0x11c] sm:$0xf] }
   0x2   :  { %v2568_v2 = vld [vmem:[%s5180_s1 + $0x258] sm:$0xf]  ;;  %v2409_v3 = vor.u32 %v3340_v1, %v2408_v0  ;;  %v3380_v4 = vld [vmem:[%s5180_s1 + $0x268] sm:$0xf0]  ;;  %v2410_v6 = vld [vmem:[%s5180_s1 + $0x12c] sm:$0xf0] }
   0x3   :  { %v2569_v7 = vor.u32 %v3380_v4, %v2568_v2  ;;  %v2413_v8 = vor.u32 %v3338_v5, %v2410_v6  ;;  %v3378_v9 = vld [vmem:[%s5180_s1 + $0x25c] sm:$0xf]  ;;  %v2570_v10 = vld [vmem:[%s5180_s1 + $0x26c] sm:$0xf0]  ;;  %v3335_v13 = vld [vmem:[%s5180_s1 + $0x100] sm:$0xf0] }
   0x4   :  { %v2388_v11 = vld [vmem:[%s5180_s1 + $0xf0] sm:$0xf]  ;;  %564 = vmatpush.bf16.msra.mxu0 %v2409_v3  ;;  %v2573_v12 = vor.u32 %v3378_v9, %v2570_v10  ;;  %v3375_v15 = vld [vmem:[%s5180_s1 + $0x240] sm:$0xf0]  ;;  %v3333_v18 = vld [vmem:[%s5180_s1 + $0xf4] sm:$0xf] }
   0x5   :  { %v2548_v14 = vld [vmem:[%s5180_s1 + $0x230] sm:$0xf]  ;;  %578 = vmatpush.bf16.msra.mxu1 %v2569_v7  ;;  %592 = vmatpush.bf16.msra.mxu2 %v2413_v8  ;;  %v2389_v16 = vor.u32 %v3335_v13, %v2388_v11  ;;  %v2390_v19 = vld [vmem:[%s5180_s1 + $0x104] sm:$0xf0]  ;;  %v3373_v20 = vld [vmem:[%s5180_s1 + $0x234] sm:$0xf] }
   0x6   :  { %v2549_v17 = vor.u32 %v3375_v15, %v2548_v14  ;;  %606 = vmatpush.bf16.msra.mxu3 %v2573_v12  ;;  %v2393_v21 = vor.u32 %v3333_v18, %v2390_v19  ;;  %v2550_v22 = vld [vmem:[%s5180_s1 + $0x244] sm:$0xf0]  ;;  %v3330_v24 = vld [vmem:[%s5180_s1 + $0xd8] sm:$0xf0]  ;;  %v3328_v28 = vld [vmem:[%s5180_s1 + $0xcc] sm:$0xf] }
   0x7   :  { %v2368_v23 = vld [vmem:[%s5180_s1 + $0xc8] sm:$0xf]  ;;  %v2553_v25 = vor.u32 %v3373_v20, %v2550_v22  ;;  %v3370_v27 = vld [vmem:[%s5180_s1 + $0x218] sm:$0xf0]  ;;  %v2370_v30 = vld [vmem:[%s5180_s1 + $0xdc] sm:$0xf0] }
   0x8   :  { %v2528_v26 = vld [vmem:[%s5180_s1 + $0x208] sm:$0xf]  ;;  %565 = vmatpush.bf16.msra.mxu0 %v2389_v16  ;;  %v2369_v29 = vor.u32 %v3330_v24, %v2368_v23  ;;  %v3368_v31 = vld [vmem:[%s5180_s1 + $0x20c] sm:$0xf]  ;;  %v2530_v32 = vld [vmem:[%s5180_s1 + $0x21c] sm:$0xf0]  ;;  %v2373_v34 = vor.u32 %v3328_v28, %v2370_v30 }
   0x9   :  { %579 = vmatpush.bf16.msra.mxu1 %v2549_v17  ;;  %593 = vmatpush.bf16.msra.mxu2 %v2393_v21  ;;  %v2529_v33 = vor.u32 %v3370_v27, %v2528_v26  ;;  %v2348_v35 = vld [vmem:[%s5180_s1 + $0xa0] sm:$0xf]  ;;  %v3325_v36 = vld [vmem:[%s5180_s1 + $0xb0] sm:$0xf0]  ;;  %v2533_v38 = vor.u32 %v3368_v31, %v2530_v32  ;;  %v3323_v40 = vld [vmem:[%s5180_s1 + $0xa4] sm:$0xf] }
   0xa   :  { %v2508_v37 = vld [vmem:[%s5180_s1 + $0x1e0] sm:$0xf]  ;;  %607 = vmatpush.bf16.msra.mxu3 %v2553_v25  ;;  %v3365_v39 = vld [vmem:[%s5180_s1 + $0x1f0] sm:$0xf0]  ;;  %v2350_v41 = vld [vmem:[%s5180_s1 + $0xb4] sm:$0xf0]  ;;  %v2349_v44 = vor.u32 %v3325_v36, %v2348_v35 }
   0xb   :  { %v3363_v42 = vld [vmem:[%s5180_s1 + $0x1e4] sm:$0xf]  ;;  %v2510_v43 = vld [vmem:[%s5180_s1 + $0x1f4] sm:$0xf0]  ;;  %v2509_v45 = vor.u32 %v3365_v39, %v2508_v37  ;;  %v2353_v46 = vor.u32 %v3323_v40, %v2350_v41  ;;  %v3320_v48 = vld [vmem:[%s5180_s1 + $0x88] sm:$0xf0] }
   0xc   :  { %566 = vmatpush.bf16.msra.mxu0 %v2369_v29  ;;  %v2328_v47 = vld [vmem:[%s5180_s1 + $0x78] sm:$0xf]  ;;  %v2513_v50 = vor.u32 %v3363_v42, %v2510_v43  ;;  %v3360_v51 = vld [vmem:[%s5180_s1 + $0x1c8] sm:$0xf0]  ;;  %v3318_v52 = vld [vmem:[%s5180_s1 + $0x7c] sm:$0xf] }
   0xd   :  { %580 = vmatpush.bf16.msra.mxu1 %v2529_v33  ;;  %594 = vmatpush.bf16.msra.mxu2 %v2373_v34  ;;  %v2488_v49 = vld [vmem:[%s5180_s1 + $0x1b8] sm:$0xf]  ;;  %v2330_v53 = vld [vmem:[%s5180_s1 + $0x8c] sm:$0xf0]  ;;  %v3358_v54 = vld [vmem:[%s5180_s1 + $0x1bc] sm:$0xf]  ;;  %v2329_v56 = vor.u32 %v3320_v48, %v2328_v47 }
   0xe   :  { %608 = vmatpush.bf16.msra.mxu3 %v2533_v38  ;;  %v2490_v55 = vld [vmem:[%s5180_s1 + $0x1cc] sm:$0xf0]  ;;  %v2489_v57 = vor.u32 %v3360_v51, %v2488_v49  ;;  %v2333_v58 = vor.u32 %v3318_v52, %v2330_v53  ;;  %v3315_v60 = vld [vmem:[%s5180_s1 + $0x60] sm:$0xf0]  ;;  %v3313_v0 = vld [vmem:[%s5180_s1 + $0x54] sm:$0xf] }
   0xf   :  { %v2308_v59 = vld [vmem:[%s5180_s1 + $0x50] sm:$0xf]  ;;  %v2493_v62 = vor.u32 %v3358_v54, %v2490_v55  ;;  %v3355_v63 = vld [vmem:[%s5180_s1 + $0x1a0] sm:$0xf0]  ;;  %v2310_v1 = vld [vmem:[%s5180_s1 + $0x64] sm:$0xf0] }
  0x10   :  { %567 = vmatpush.bf16.msra.mxu0 %v2349_v44  ;;  %v2468_v61 = vld [vmem:[%s5180_s1 + $0x190] sm:$0xf]  ;;  %v3353_v2 = vld [vmem:[%s5180_s1 + $0x194] sm:$0xf]  ;;  %v2470_v3 = vld [vmem:[%s5180_s1 + $0x1a4] sm:$0xf0]  ;;  %v2309_v4 = vor.u32 %v3315_v60, %v2308_v59  ;;  %v2313_v6 = vor.u32 %v3313_v0, %v2310_v1 }
  0x11   :  { %581 = vmatpush.bf16.msra.mxu1 %v2509_v45  ;;  %595 = vmatpush.bf16.msra.mxu2 %v2353_v46  ;;  %v2469_v5 = vor.u32 %v3355_v63, %v2468_v61  ;;  %v2288_v7 = vld [vmem:[%s5180_s1 + $0x28] sm:$0xf]  ;;  %v3310_v8 = vld [vmem:[%s5180_s1 + $0x38] sm:$0xf0]  ;;  %v2473_v10 = vor.u32 %v3353_v2, %v2470_v3  ;;  %v3308_v12 = vld [vmem:[%s5180_s1 + $0x2c] sm:$0xf] }
  0x12   :  { %609 = vmatpush.bf16.msra.mxu3 %v2513_v50  ;;  %v2448_v9 = vld [vmem:[%s5180_s1 + $0x168] sm:$0xf]  ;;  %v3350_v11 = vld [vmem:[%s5180_s1 + $0x178] sm:$0xf0]  ;;  %v2290_v13 = vld [vmem:[%s5180_s1 + $0x3c] sm:$0xf0]  ;;  %v2289_v16 = vor.u32 %v3310_v8, %v2288_v7 }
  0x13   :  { %v3348_v14 = vld [vmem:[%s5180_s1 + $0x16c] sm:$0xf]  ;;  %v2450_v15 = vld [vmem:[%s5180_s1 + $0x17c] sm:$0xf0]  ;;  %v3305_v18 = vld [vmem:[%s5180_s1 + $0x10] sm:$0xf0]  ;;  %v2449_v20 = vor.u32 %v3350_v11, %v2448_v9  ;;  %v2293_v21 = vor.u32 %v3308_v12, %v2290_v13 }
  0x14   :  { %568 = vmatpush.bf16.msra.mxu0 %v2329_v56  ;;  %v2268_v17 = vld [vmem:[%s5180_s1] sm:$0xf]  ;;  %v3345_v22 = vld [vmem:[%s5180_s1 + $0x150] sm:$0xf0]  ;;  %v3303_v23 = vld [vmem:[%s5180_s1 + $0x4] sm:$0xf]  ;;  %v2453_v25 = vor.u32 %v3348_v14, %v2450_v15 }
  0x15   :  { %582 = vmatpush.bf16.msra.mxu1 %v2489_v57  ;;  %596 = vmatpush.bf16.msra.mxu2 %v2333_v58  ;;  %v2428_v19 = vld [vmem:[%s5180_s1 + $0x140] sm:$0xf]  ;;  %v2270_v24 = vld [vmem:[%s5180_s1 + $0x14] sm:$0xf0]  ;;  %v3341_v27 = vld [vmem:[%s5180_s1 + $0x130] sm:$0xf0]  ;;  %v2269_v32 = vor.u32 %v3305_v18, %v2268_v17 }
  0x16   :  { %610 = vmatpush.bf16.msra.mxu3 %v2493_v62  ;;  %v2416_v26 = vld [vmem:[%s5180_s1 + $0x120] sm:$0xf]  ;;  %v3381_v29 = vld [vmem:[%s5180_s1 + $0x270] sm:$0xf0]  ;;  %v3339_v30 = vld [vmem:[%s5180_s1 + $0x124] sm:$0xf]  ;;  %v2429_v36 = vor.u32 %v3345_v22, %v2428_v19  ;;  %v2273_v37 = vor.u32 %v3303_v23, %v2270_v24 }
  0x17   :  { %v2576_v28 = vld [vmem:[%s5180_s1 + $0x260] sm:$0xf]  ;;  %v2418_v31 = vld [vmem:[%s5180_s1 + $0x134] sm:$0xf0]  ;;  %v3343_v33 = vld [vmem:[%s5180_s1 + $0x144] sm:$0xf]  ;;  %v2417_v41 = vor.u32 %v3341_v27, %v2416_v26 }
  0x18   :  { %569 = vmatpush.bf16.msra.mxu0 %v2309_v4  ;;  %v2430_v34 = vld [vmem:[%s5180_s1 + $0x154] sm:$0xf0]  ;;  %v34_v35 = vld [vmem:[%s5179_s0] sm:$0xff]  ;;  %v36_v38 = vld [vmem:[%s5179_s0 + $0x10] sm:$0xff]  ;;  %v2577_v42 = vor.u32 %v3381_v29, %v2576_v28  ;;  %v2421_v45 = vor.u32 %v3339_v30, %v2418_v31 }
  0x19   :  { %583 = vmatpush.bf16.msra.mxu1 %v2469_v5  ;;  %597 = vmatpush.bf16.msra.mxu2 %v2313_v6  ;;  %v3379_v39 = vld [vmem:[%s5180_s1 + $0x264] sm:$0xf]  ;;  %v2578_v40 = vld [vmem:[%s5180_s1 + $0x274] sm:$0xf0]  ;;  %v35_v43 = vld [vmem:[%s5179_s0 + $0x8] sm:$0xff]  ;;  %v2433_v46 = vor.u32 %v3343_v33, %v2430_v34  ;;  %v3882_v50 = vpack.c.bf16 %v36_v38, %v34_v35 }
  0x1a   :  { %611 = vmatpush.bf16.msra.mxu3 %v2473_v10  ;;  %v37_v44 = vld [vmem:[%s5179_s0 + $0x18] sm:$0xff]  ;;  %v3336_v48 = vld [vmem:[%s5180_s1 + $0x108] sm:$0xf0]  ;;  %v2581_v51 = vor.u32 %v3379_v39, %v2578_v40  ;;  %v2398_v54 = vld [vmem:[%s5180_s1 + $0x10c] sm:$0xf0] }
  0x1b   :  { %v2396_v47 = vld [vmem:[%s5180_s1 + $0xf8] sm:$0xf]  ;;  %v3376_v52 = vld [vmem:[%s5180_s1 + $0x248] sm:$0xf0]  ;;  %v3334_v53 = vld [vmem:[%s5180_s1 + $0xfc] sm:$0xf]  ;;  %v3899_v57 = vpack.c.bf16 %v37_v44, %v35_v43 }
  0x1c   :  { %570 = vmatpush.bf16.msra.mxu0 %v2289_v16  ;;  %v2556_v49 = vld [vmem:[%s5180_s1 + $0x238] sm:$0xf]  ;;  %v3374_v55 = vld [vmem:[%s5180_s1 + $0x23c] sm:$0xf]  ;;  %v2558_v56 = vld [vmem:[%s5180_s1 + $0x24c] sm:$0xf0]  ;;  %v2397_v58 = vor.u32 %v3336_v48, %v2396_v47  ;;  %v2401_v60 = vor.u32 %v3334_v53, %v2398_v54 }
  0x1d   :  { %584 = vmatpush.bf16.msra.mxu1 %v2449_v20  ;;  %598 = vmatpush.bf16.msra.mxu2 %v2293_v21  ;;  %v2557_v59 = vor.u32 %v3376_v52, %v2556_v49  ;;  %v2376_v61 = vld [vmem:[%s5180_s1 + $0xd0] sm:$0xf]  ;;  %v3331_v62 = vld [vmem:[%s5180_s1 + $0xe0] sm:$0xf0]  ;;  %v2561_v0 = vor.u32 %v3374_v55, %v2558_v56  ;;  %v3329_v2 = vld [vmem:[%s5180_s1 + $0xd4] sm:$0xf] }
  0x1e   :  { %612 = vmatpush.bf16.msra.mxu3 %v2453_v25  ;;  %v2536_v63 = vld [vmem:[%s5180_s1 + $0x210] sm:$0xf]  ;;  %v3371_v1 = vld [vmem:[%s5180_s1 + $0x220] sm:$0xf0]  ;;  %v2378_v3 = vld [vmem:[%s5180_s1 + $0xe4] sm:$0xf0]  ;;  %v2377_v6 = vor.u32 %v3331_v62, %v2376_v61 }
  0x1f   :  { %v3369_v4 = vld [vmem:[%s5180_s1 + $0x214] sm:$0xf]  ;;  %v2538_v5 = vld [vmem:[%s5180_s1 + $0x224] sm:$0xf0]  ;;  %v2537_v7 = vor.u32 %v3371_v1, %v2536_v63  ;;  %v2381_v8 = vor.u32 %v3329_v2, %v2378_v3  ;;  %v3326_v10 = vld [vmem:[%s5180_s1 + $0xb8] sm:$0xf0] }
  0x20   :  { %571 = vmatpush.bf16.msra.mxu0 %v2269_v32  ;;  %v2356_v9 = vld [vmem:[%s5180_s1 + $0xa8] sm:$0xf]  ;;  %v2541_v12 = vor.u32 %v3369_v4, %v2538_v5  ;;  %v3366_v13 = vld [vmem:[%s5180_s1 + $0x1f8] sm:$0xf0]  ;;  %v3324_v14 = vld [vmem:[%s5180_s1 + $0xac] sm:$0xf] }
  0x21   :  { %585 = vmatpush.bf16.msra.mxu1 %v2429_v36  ;;  %599 = vmatpush.bf16.msra.mxu2 %v2273_v37  ;;  %v2516_v11 = vld [vmem:[%s5180_s1 + $0x1e8] sm:$0xf]  ;;  %v2358_v15 = vld [vmem:[%s5180_s1 + $0xbc] sm:$0xf0]  ;;  %v3364_v16 = vld [vmem:[%s5180_s1 + $0x1ec] sm:$0xf]  ;;  %v2357_v18 = vor.u32 %v3326_v10, %v2356_v9 }
  0x22   :  { %613 = vmatpush.bf16.msra.mxu3 %v2433_v46  ;;  %v2518_v17 = vld [vmem:[%s5180_s1 + $0x1fc] sm:$0xf0]  ;;  %v2517_v19 = vor.u32 %v3366_v13, %v2516_v11  ;;  %v2361_v20 = vor.u32 %v3324_v14, %v2358_v15  ;;  %v3321_v22 = vld [vmem:[%s5180_s1 + $0x90] sm:$0xf0]  ;;  %v3319_v26 = vld [vmem:[%s5180_s1 + $0x84] sm:$0xf] }
  0x23   :  { %572 = vmatmul.bf16.vlgmr.msra.gmra.mxu0 %v3882_v50  ;;  %v2336_v21 = vld [vmem:[%s5180_s1 + $0x80] sm:$0xf]  ;;  %v2521_v24 = vor.u32 %v3364_v16, %v2518_v17  ;;  %v3361_v25 = vld [vmem:[%s5180_s1 + $0x1d0] sm:$0xf0]  ;;  %v2338_v27 = vld [vmem:[%s5180_s1 + $0x94] sm:$0xf0] }
  0x24   :  { %620 = vmatpush.bf16.msrb.mxu0 %v2417_v41  ;;  %600 = vmatmul.bf16.vlgmr.msra.gmra.mxu2 %v3882_v50  ;;  %v2496_v23 = vld [vmem:[%s5180_s1 + $0x1c0] sm:$0xf]  ;;  %v3359_v28 = vld [vmem:[%s5180_s1 + $0x1c4] sm:$0xf]  ;;  %v2498_v29 = vld [vmem:[%s5180_s1 + $0x1d4] sm:$0xf0]  ;;  %v2337_v30 = vor.u32 %v3321_v22, %v2336_v21  ;;  %v2341_v32 = vor.u32 %v3319_v26, %v2338_v27 }
  0x25   :  { %634 = vmatpush.bf16.msrb.mxu1 %v2577_v42  ;;  %648 = vmatpush.bf16.msrb.mxu2 %v2421_v45  ;;  %v2497_v31 = vor.u32 %v3361_v25, %v2496_v23  ;;  %v2316_v33 = vld [vmem:[%s5180_s1 + $0x58] sm:$0xf]  ;;  %v3316_v34 = vld [vmem:[%s5180_s1 + $0x68] sm:$0xf0]  ;;  %v2501_v36 = vor.u32 %v3359_v28, %v2498_v29  ;;  %v3314_v38 = vld [vmem:[%s5180_s1 + $0x5c] sm:$0xf] }
  0x26   :  { %662 = vmatpush.bf16.msrb.mxu3 %v2581_v51  ;;  %586 = vmatmul.bf16.vlgmr.msra.gmra.mxu1 %v3899_v57  ;;  %v2476_v35 = vld [vmem:[%s5180_s1 + $0x198] sm:$0xf]  ;;  %v3356_v37 = vld [vmem:[%s5180_s1 + $0x1a8] sm:$0xf0]  ;;  %v2318_v39 = vld [vmem:[%s5180_s1 + $0x6c] sm:$0xf0]  ;;  %v2317_v42 = vor.u32 %v3316_v34, %v2316_v33 }
  0x27   :  { %614 = vmatmul.bf16.vlgmr.msra.gmra.mxu3 %v3899_v57  ;;  %v3354_v40 = vld [vmem:[%s5180_s1 + $0x19c] sm:$0xf]  ;;  %v2478_v41 = vld [vmem:[%s5180_s1 + $0x1ac] sm:$0xf0]  ;;  %v2477_v43 = vor.u32 %v3356_v37, %v2476_v35  ;;  %v2321_v44 = vor.u32 %v3314_v38, %v2318_v39  ;;  %v3311_v46 = vld [vmem:[%s5180_s1 + $0x40] sm:$0xf0] }
  0x28   :  { %621 = vmatpush.bf16.msrb.mxu0 %v2397_v58  ;;  %v2296_v45 = vld [vmem:[%s5180_s1 + $0x30] sm:$0xf]  ;;  %v2481_v48 = vor.u32 %v3354_v40, %v2478_v41  ;;  %v3351_v49 = vld [vmem:[%s5180_s1 + $0x180] sm:$0xf0]  ;;  %v3309_v51 = vld [vmem:[%s5180_s1 + $0x34] sm:$0xf] }
  0x29   :  { %635 = vmatpush.bf16.msrb.mxu1 %v2557_v59  ;;  %649 = vmatpush.bf16.msrb.mxu2 %v2401_v60  ;;  %v2456_v47 = vld [vmem:[%s5180_s1 + $0x170] sm:$0xf]  ;;  %v2298_v52 = vld [vmem:[%s5180_s1 + $0x44] sm:$0xf0]  ;;  %v3349_v53 = vld [vmem:[%s5180_s1 + $0x174] sm:$0xf]  ;;  %v2297_v55 = vor.u32 %v3311_v46, %v2296_v45 }
  0x2a   :  { %663 = vmatpush.bf16.msrb.mxu3 %v2561_v0  ;;  %v2458_v54 = vld [vmem:[%s5180_s1 + $0x184] sm:$0xf0]  ;;  %v3306_v58 = vld [vmem:[%s5180_s1 + $0x18] sm:$0xf0]  ;;  %v2457_v59 = vor.u32 %v3351_v49, %v2456_v47  ;;  %v2301_v60 = vor.u32 %v3309_v51, %v2298_v52 }
  0x2b   :  { %v2276_v56 = vld [vmem:[%s5180_s1 + $0x8] sm:$0xf]  ;;  %v3346_v62 = vld [vmem:[%s5180_s1 + $0x158] sm:$0xf0] }
  0x2c   :  { %622 = vmatpush.bf16.msrb.mxu0 %v2377_v6  ;;  %v2436_v61 = vld [vmem:[%s5180_s1 + $0x148] sm:$0xf] }
  0x2d   :  { %636 = vmatpush.bf16.msrb.mxu1 %v2537_v7  ;;  %650 = vmatpush.bf16.msrb.mxu2 %v2381_v8 }
  0x2e   :  { %664 = vmatpush.bf16.msrb.mxu3 %v2541_v12 }
  0x30   :  { %623 = vmatpush.bf16.msrb.mxu0 %v2357_v18 }
  0x31   :  { %637 = vmatpush.bf16.msrb.mxu1 %v2517_v19  ;;  %651 = vmatpush.bf16.msrb.mxu2 %v2361_v20 }
  0x32   :  { %665 = vmatpush.bf16.msrb.mxu3 %v2521_v24 }
  0x34   :  { %624 = vmatpush.bf16.msrb.mxu0 %v2337_v30 }
  0x35   :  { %638 = vmatpush.bf16.msrb.mxu1 %v2497_v31  ;;  %652 = vmatpush.bf16.msrb.mxu2 %v2341_v32 }
  0x36   :  { %666 = vmatpush.bf16.msrb.mxu3 %v2501_v36 }
  0x38   :  { %625 = vmatpush.bf16.msrb.mxu0 %v2317_v42 }
  0x39   :  { %639 = vmatpush.bf16.msrb.mxu1 %v2477_v43  ;;  %653 = vmatpush.bf16.msrb.mxu2 %v2321_v44 }
  0x3a   :  { %14 = vsyncpa [#allocation3], 0  ;;  %667 = vmatpush.bf16.msrb.mxu3 %v2481_v48  ;;  %v2461_v63 = vor.u32 %v3349_v53, %v2458_v54  ;;  %v3304_v0 = vld [vmem:[%s5180_s1 + $0xc] sm:$0xf]  ;;  %v2278_v1 = vld [vmem:[%s5180_s1 + $0x1c] sm:$0xf0]  ;;  %v2277_v6 = vor.u32 %v3306_v58, %v2276_v56  ;;  %v2437_v9 = vor.u32 %v3346_v62, %v2436_v61 }
  0x3b   :  { %v2424_v2 = vld [vmem:[%s5180_s1 + $0x128] sm:$0xf]  ;;  %v3342_v3 = vld [vmem:[%s5180_s1 + $0x138] sm:$0xf0]  ;;  %v3344_v7 = vld [vmem:[%s5180_s1 + $0x14c] sm:$0xf]  ;;  %v2281_v10 = vor.u32 %v3304_v0, %v2278_v1 }
  0x3c   :  { %v2584_v4 = vld [vmem:[%s5180_s1 + $0x268] sm:$0xf]  ;;  %v3382_v5 = vld [vmem:[%s5180_s1 + $0x278] sm:$0xf0]  ;;  %626 = vmatpush.bf16.msrb.mxu0 %v2297_v55  ;;  %v2438_v8 = vld [vmem:[%s5180_s1 + $0x15c] sm:$0xf0]  ;;  %v2425_v11 = vor.u32 %v3342_v3, %v2424_v2 }
  0x3d   :  { %640 = vmatpush.bf16.msrb.mxu1 %v2457_v59  ;;  %654 = vmatpush.bf16.msrb.mxu2 %v2301_v60  ;;  %v2585_v12 = vor.u32 %v3382_v5, %v2584_v4  ;;  %v2441_v13 = vor.u32 %v3344_v7, %v2438_v8  ;;  %v2404_v14 = vld [vmem:[%s5180_s1 + $0x100] sm:$0xf]  ;;  %v3337_v15 = vld [vmem:[%s5180_s1 + $0x110] sm:$0xf0]  ;;  %v3445_v20 = vld [vmem:[%s5182_s3 + $0x1ec] sm:$0xf0] }
  0x3e   :  { %668 = vmatpush.bf16.msrb.mxu3 %v2461_v63  ;;  %v2564_v16 = vld [vmem:[%s5180_s1 + $0x240] sm:$0xf]  ;;  %v3377_v17 = vld [vmem:[%s5180_s1 + $0x250] sm:$0xf0]  ;;  %v2405_v18 = vor.u32 %v3337_v15, %v2404_v14  ;;  %v2384_v23 = vld [vmem:[%s5180_s1 + $0xd8] sm:$0xf] }
  0x3f   :  { %v2828_v19 = vld [vmem:[%s5182_s3 + $0x1e0] sm:$0xf]  ;;  %v2565_v22 = vor.u32 %v3377_v17, %v2564_v16  ;;  %v3332_v24 = vld [vmem:[%s5180_s1 + $0xe8] sm:$0xf0]  ;;  %v3441_v26 = vld [vmem:[%s5182_s3 + $0x1cc] sm:$0xf0] }
  0x40   :  { %627 = vmatpush.bf16.msrb.mxu0 %v2277_v6  ;;  %v2812_v21 = vld [vmem:[%s5182_s3 + $0x1c0] sm:$0xf]  ;;  %v2829_v25 = vor.u32 %v3445_v20, %v2828_v19  ;;  %v2544_v27 = vld [vmem:[%s5180_s1 + $0x218] sm:$0xf]  ;;  %v3372_v28 = vld [vmem:[%s5180_s1 + $0x228] sm:$0xf0]  ;;  %v2385_v30 = vor.u32 %v3332_v24, %v2384_v23 }
  0x41   :  { %641 = vmatpush.bf16.msrb.mxu1 %v2437_v9  ;;  %655 = vmatpush.bf16.msrb.mxu2 %v2281_v10  ;;  %v2813_v29 = vor.u32 %v3441_v26, %v2812_v21  ;;  %v2364_v31 = vld [vmem:[%s5180_s1 + $0xb0] sm:$0xf]  ;;  %v2796_v32 = vld [vmem:[%s5182_s3 + $0x1a0] sm:$0xf]  ;;  %v2545_v34 = vor.u32 %v3372_v28, %v2544_v27  ;;  %v3327_v35 = vld [vmem:[%s5180_s1 + $0xc0] sm:$0xf0] }
  0x42   :  { %669 = vmatpush.bf16.msrb.mxu3 %v2441_v13  ;;  %v3437_v33 = vld [vmem:[%s5182_s3 + $0x1ac] sm:$0xf0]  ;;  %v2700_v36 = vld [vmem:[%s5182_s3 + $0xe0] sm:$0xf]  ;;  %v3367_v39 = vld [vmem:[%s5180_s1 + $0x200] sm:$0xf0]  ;;  %v2365_v43 = vor.u32 %v3327_v35, %v2364_v31 }
  0x43   :  { %628 = vmatmul.bf16.vlgmr.msrb.gmra.mxu0 %v3882_v50  ;;  %v3413_v37 = vld [vmem:[%s5182_s3 + $0xec] sm:$0xf0]  ;;  %v2797_v41 = vor.u32 %v3437_v33, %v2796_v32  ;;  %v2780_v42 = vld [vmem:[%s5182_s3 + $0x180] sm:$0xf]  ;;  %v2344_v48 = vld [vmem:[%s5180_s1 + $0x88] sm:$0xf] }
  0x44   :  { %676 = vmatpush.bf16.msra.mxu0 %v2425_v11  ;;  %656 = vmatmul.bf16.vlgmr.msrb.gmra.mxu2 %v3882_v50  ;;  %v2524_v38 = vld [vmem:[%s5180_s1 + $0x1f0] sm:$0xf]  ;;  %v2701_v40 = vor.u32 %v3413_v37, %v2700_v36  ;;  %v2684_v45 = vld [vmem:[%s5182_s3 + $0xc0] sm:$0xf]  ;;  %v3322_v49 = vld [vmem:[%s5180_s1 + $0x98] sm:$0xf0] }
  0x45   :  { %690 = vmatpush.bf16.msra.mxu1 %v2585_v12  ;;  %670 = vmatmul.bf16.vlgmr.msrb.gmra.mxu3 %v3899_v57  ;;  %v3433_v44 = vld [vmem:[%s5182_s3 + $0x18c] sm:$0xf0]  ;;  %v2525_v47 = vor.u32 %v3367_v39, %v2524_v38  ;;  %v2504_v52 = vld [vmem:[%s5180_s1 + $0x1c8] sm:$0xf]  ;;  %v3362_v53 = vld [vmem:[%s5180_s1 + $0x1d8] sm:$0xf0]  ;;  %v2345_v58 = vor.u32 %v3322_v49, %v2344_v48 }
  0x46   :  { %642 = vmatmul.bf16.vlgmr.msrb.gmra.mxu1 %v3899_v57  ;;  %1611 = vmatpush.bf16.msra.mxu3 %v2829_v25  ;;  %v3409_v46 = vld [vmem:[%s5182_s3 + $0xcc] sm:$0xf0]  ;;  %v2668_v54 = vld [vmem:[%s5182_s3 + $0xa0] sm:$0xf]  ;;  %v2781_v55 = vor.u32 %v3433_v44, %v2780_v42  ;;  %v2505_v62 = vor.u32 %v3362_v53, %v2504_v52  ;;  %v3317_v0 = vld [vmem:[%s5180_s1 + $0x70] sm:$0xf0] }
  0x47   :  { %1597 = vmatpush.bf16.msra.mxu2 %v2701_v40  ;;  %v2685_v51 = vor.u32 %v3409_v46, %v2684_v45  ;;  %v3405_v56 = vld [vmem:[%s5182_s3 + $0xac] sm:$0xf0]  ;;  %v2764_v59 = vld [vmem:[%s5182_s3 + $0x160] sm:$0xf]  ;;  %v3357_v2 = vld [vmem:[%s5180_s1 + $0x1b0] sm:$0xf0] }
  0x48   :  { %677 = vmatpush.bf16.msra.mxu0 %v2405_v18  ;;  %v3429_v60 = vld [vmem:[%s5182_s3 + $0x16c] sm:$0xf0]  ;;  %v2669_v61 = vor.u32 %v3405_v56, %v2668_v54  ;;  %v2324_v63 = vld [vmem:[%s5180_s1 + $0x60] sm:$0xf]  ;;  %v2304_v8 = vld [vmem:[%s5180_s1 + $0x38] sm:$0xf] }
  0x49   :  { %691 = vmatpush.bf16.msra.mxu1 %v2565_v22  ;;  %v2484_v1 = vld [vmem:[%s5180_s1 + $0x1a0] sm:$0xf]  ;;  %v2765_v3 = vor.u32 %v3429_v60, %v2764_v59  ;;  %v2325_v4 = vor.u32 %v3317_v0, %v2324_v63  ;;  %v3425_v6 = vld [vmem:[%s5182_s3 + $0x14c] sm:$0xf0]  ;;  %v3312_v9 = vld [vmem:[%s5180_s1 + $0x48] sm:$0xf0] }
  0x4a   :  { %1612 = vmatpush.bf16.msra.mxu3 %v2813_v29  ;;  %v2748_v5 = vld [vmem:[%s5182_s3 + $0x140] sm:$0xf]  ;;  %v2485_v7 = vor.u32 %v3357_v2, %v2484_v1  ;;  %v2464_v10 = vld [vmem:[%s5180_s1 + $0x178] sm:$0xf]  ;;  %v3352_v11 = vld [vmem:[%s5180_s1 + $0x188] sm:$0xf0]  ;;  %v2305_v13 = vor.u32 %v3312_v9, %v2304_v8 }
  0x4b   :  { %1598 = vmatpush.bf16.msra.mxu2 %v2685_v51  ;;  %v2749_v12 = vor.u32 %v3425_v6, %v2748_v5  ;;  %v2732_v14 = vld [vmem:[%s5182_s3 + $0x120] sm:$0xf]  ;;  %v3421_v15 = vld [vmem:[%s5182_s3 + $0x12c] sm:$0xf0]  ;;  %v2465_v16 = vor.u32 %v3352_v11, %v2464_v10  ;;  %v3307_v18 = vld [vmem:[%s5180_s1 + $0x20] sm:$0xf0] }
  0x4c   :  { %678 = vmatpush.bf16.msra.mxu0 %v2385_v30  ;;  %v2284_v17 = vld [vmem:[%s5180_s1 + $0x10] sm:$0xf]  ;;  %v3347_v20 = vld [vmem:[%s5180_s1 + $0x160] sm:$0xf0]  ;;  %v2956_v21 = vld [vmem:[%s5182_s3 + $0x2e0] sm:$0xf]  ;;  %v2733_v25 = vor.u32 %v3421_v15, %v2732_v14 }
  0x4d   :  { %692 = vmatpush.bf16.msra.mxu1 %v2545_v34  ;;  %v2444_v19 = vld [vmem:[%s5180_s1 + $0x150] sm:$0xf]  ;;  %v3084_v23 = vld [vmem:[%s5182_s3 + $0x3e0] sm:$0xf]  ;;  %v2285_v26 = vor.u32 %v3307_v18, %v2284_v17  ;;  %v3411_v31 = vld [vmem:[%s5182_s3 + $0xe4] sm:$0xf] }
  0x4e   :  { %1613 = vmatpush.bf16.msra.mxu3 %v2797_v41  ;;  %v3477_v22 = vld [vmem:[%s5182_s3 + $0x2ec] sm:$0xf0]  ;;  %v2716_v27 = vld [vmem:[%s5182_s3 + $0x100] sm:$0xf]  ;;  %v2445_v29 = vor.u32 %v3347_v20, %v2444_v19  ;;  %v2702_v32 = vld [vmem:[%s5182_s3 + $0xf0] sm:$0xf0] }
  0x4f   :  { %1599 = vmatpush.bf16.msra.mxu2 %v2669_v61  ;;  %v3509_v24 = vld [vmem:[%s5182_s3 + $0x3ec] sm:$0xf0]  ;;  %v2957_v30 = vor.u32 %v3477_v22, %v2956_v21  ;;  %v2940_v33 = vld [vmem:[%s5182_s3 + $0x2c0] sm:$0xf]  ;;  %v2705_v39 = vor.u32 %v3411_v31, %v2702_v32  ;;  %v2686_v63 = vld [vmem:[%s5182_s3 + $0xd0] sm:$0xf0] }
  0x50   :  { %679 = vmatpush.bf16.msra.mxu0 %v2365_v43  ;;  %v3417_v28 = vld [vmem:[%s5182_s3 + $0x10c] sm:$0xf0]  ;;  %v3085_v35 = vor.u32 %v3509_v24, %v3084_v23  ;;  %v3068_v36 = vld [vmem:[%s5182_s3 + $0x3c0] sm:$0xf]  ;;  %v3403_v10 = vld [vmem:[%s5182_s3 + $0xa4] sm:$0xf] }
  0x51   :  { %693 = vmatpush.bf16.msra.mxu1 %v2525_v47  ;;  %v3473_v34 = vld [vmem:[%s5182_s3 + $0x2cc] sm:$0xf0]  ;;  %v2717_v38 = vor.u32 %v3417_v28, %v2716_v27  ;;  %v2924_v41 = vld [vmem:[%s5182_s3 + $0x2a0] sm:$0xf]  ;;  %v3399_v22 = vld [vmem:[%s5182_s3 + $0x84] sm:$0xf] }
  0x52   :  { %1614 = vmatpush.bf16.msra.mxu3 %v2781_v55  ;;  %v3505_v37 = vld [vmem:[%s5182_s3 + $0x3cc] sm:$0xf0]  ;;  %v2941_v40 = vor.u32 %v3473_v34, %v2940_v33  ;;  %v3052_v44 = vld [vmem:[%s5182_s3 + $0x3a0] sm:$0xf]  ;;  %v2654_v23 = vld [vmem:[%s5182_s3 + $0x90] sm:$0xf0] }
  0x53   :  { %v3469_v42 = vld [vmem:[%s5182_s3 + $0x2ac] sm:$0xf0]  ;;  %v3069_v43 = vor.u32 %v3505_v37, %v3068_v36  ;;  %v2908_v47 = vld [vmem:[%s5182_s3 + $0x280] sm:$0xf]  ;;  %v2958_v27 = vld [vmem:[%s5182_s3 + $0x2f0] sm:$0xf0] }
  0x54   :  { %680 = vmatpush.bf16.msra.mxu0 %v2345_v58  ;;  %v3501_v45 = vld [vmem:[%s5182_s3 + $0x3ac] sm:$0xf0]  ;;  %v2925_v46 = vor.u32 %v3469_v42, %v2924_v41  ;;  %v3036_v53 = vld [vmem:[%s5182_s3 + $0x380] sm:$0xf]  ;;  %v2638_v36 = vld [vmem:[%s5182_s3 + $0x70] sm:$0xf0] }
  0x55   :  { %694 = vmatpush.bf16.msra.mxu1 %v2505_v62  ;;  %v3053_v48 = vor.u32 %v3501_v45, %v3052_v44  ;;  %v3461_v51 = vld [vmem:[%s5182_s3 + $0x26c] sm:$0xf0]  ;;  %v2652_v56 = vld [vmem:[%s5182_s3 + $0x80] sm:$0xf]  ;;  %v3407_v62 = vld [vmem:[%s5182_s3 + $0xc4] sm:$0xf] }
  0x56   :  { %1615 = vmatpush.bf16.msra.mxu3 %v2765_v3  ;;  %v3497_v54 = vld [vmem:[%s5182_s3 + $0x38c] sm:$0xf0]  ;;  %v2876_v59 = vld [vmem:[%s5182_s3 + $0x240] sm:$0xf]  ;;  %v2689_v1 = vor.u32 %v3407_v62, %v2686_v63  ;;  %v3471_v37 = vld [vmem:[%s5182_s3 + $0x2c4] sm:$0xf] }
  0x57   :  { %v3037_v55 = vor.u32 %v3497_v54, %v3036_v53  ;;  %v3401_v58 = vld [vmem:[%s5182_s3 + $0x8c] sm:$0xf0]  ;;  %v3020_v2 = vld [vmem:[%s5182_s3 + $0x360] sm:$0xf]  ;;  %v3507_v44 = vld [vmem:[%s5182_s3 + $0x3e4] sm:$0xf] }
  0x58   :  { %681 = vmatpush.bf16.msra.mxu0 %v2325_v4  ;;  %v2653_v60 = vor.u32 %v3401_v58, %v2652_v56  ;;  %v3457_v61 = vld [vmem:[%s5182_s3 + $0x24c] sm:$0xf0]  ;;  %v2636_v5 = vld [vmem:[%s5182_s3 + $0x60] sm:$0xf]  ;;  %v3086_v45 = vld [vmem:[%s5182_s3 + $0x3f0] sm:$0xf0] }
  0x59   :  { %695 = vmatpush.bf16.msra.mxu1 %v2485_v7  ;;  %v2877_v0 = vor.u32 %v3457_v61, %v2876_v59  ;;  %v3493_v3 = vld [vmem:[%s5182_s3 + $0x36c] sm:$0xf0]  ;;  %v2860_v8 = vld [vmem:[%s5182_s3 + $0x220] sm:$0xf]  ;;  %v3070_v56 = vld [vmem:[%s5182_s3 + $0x3d0] sm:$0xf0] }
  0x5a   :  { %1616 = vmatpush.bf16.msra.mxu3 %v2749_v12  ;;  %1600 = vmatpush.bf16.msra.mxu2 %v2653_v60  ;;  %v3021_v4 = vor.u32 %v3493_v3, %v3020_v2  ;;  %v3397_v6 = vld [vmem:[%s5182_s3 + $0x6c] sm:$0xf0]  ;;  %v2670_v12 = vld [vmem:[%s5182_s3 + $0xb0] sm:$0xf0]  ;;  %v2620_v17 = vld [vmem:[%s5182_s3 + $0x40] sm:$0xf] }
  0x5b   :  { %v2637_v7 = vor.u32 %v3397_v6, %v2636_v5  ;;  %v3453_v9 = vld [vmem:[%s5182_s3 + $0x22c] sm:$0xf0]  ;;  %v2673_v15 = vor.u32 %v3403_v10, %v2670_v12  ;;  %v2844_v19 = vld [vmem:[%s5182_s3 + $0x200] sm:$0xf]  ;;  %v3387_v59 = vld [vmem:[%s5182_s3 + $0x24] sm:$0xf] }
  0x5c   :  { %682 = vmatpush.bf16.msra.mxu0 %v2305_v13  ;;  %v2861_v11 = vor.u32 %v3453_v9, %v2860_v8  ;;  %v3004_v13 = vld [vmem:[%s5182_s3 + $0x340] sm:$0xf]  ;;  %v3489_v14 = vld [vmem:[%s5182_s3 + $0x34c] sm:$0xf0]  ;;  %v2606_v60 = vld [vmem:[%s5182_s3 + $0x30] sm:$0xf0] }
  0x5d   :  { %696 = vmatpush.bf16.msra.mxu1 %v2465_v16  ;;  %v3005_v16 = vor.u32 %v3489_v14, %v3004_v13  ;;  %v3393_v18 = vld [vmem:[%s5182_s3 + $0x4c] sm:$0xf0]  ;;  %v2988_v28 = vld [vmem:[%s5182_s3 + $0x320] sm:$0xf]  ;;  %v3463_v61 = vld [vmem:[%s5182_s3 + $0x284] sm:$0xf]  ;;  %v2609_v62 = vor.u32 %v3387_v59, %v2606_v60 }
  0x5e   :  { %1617 = vmatpush.bf16.msra.mxu3 %v2733_v25  ;;  %1601 = vmatpush.bf16.msra.mxu2 %v2637_v7  ;;  %v2621_v20 = vor.u32 %v3393_v18, %v2620_v17  ;;  %v3449_v21 = vld [vmem:[%s5182_s3 + $0x20c] sm:$0xf0]  ;;  %v2657_v25 = vor.u32 %v3399_v22, %v2654_v23  ;;  %v2604_v32 = vld [vmem:[%s5182_s3 + $0x20] sm:$0xf]  ;;  %v2910_v63 = vld [vmem:[%s5182_s3 + $0x290] sm:$0xf0] }
  0x5f   :  { %v2845_v24 = vor.u32 %v3449_v21, %v2844_v19  ;;  %v3389_v33 = vld [vmem:[%s5182_s3 + $0x2c] sm:$0xf0]  ;;  %v3499_v2 = vld [vmem:[%s5182_s3 + $0x3a4] sm:$0xf]  ;;  %v3054_v3 = vld [vmem:[%s5182_s3 + $0x3b0] sm:$0xf0] }
  0x60   :  { %683 = vmatpush.bf16.msra.mxu0 %v2285_v26  ;;  %v3475_v26 = vld [vmem:[%s5182_s3 + $0x2e4] sm:$0xf]  ;;  %v2605_v34 = vor.u32 %v3389_v33, %v2604_v32  ;;  %v3481_v41 = vld [vmem:[%s5182_s3 + $0x30c] sm:$0xf0]  ;;  %v3057_v5 = vor.u32 %v3499_v2, %v3054_v3  ;;  %v3148_v6 = vld [vmem:[%s5182_s3 + $0x460] sm:$0xf] }
  0x61   :  { %697 = vmatpush.bf16.msra.mxu1 %v2445_v29  ;;  %v2961_v29 = vor.u32 %v3475_v26, %v2958_v27  ;;  %v3525_v7 = vld [vmem:[%s5182_s3 + $0x46c] sm:$0xf0]  ;;  %v3383_v8 = vld [vmem:[%s5182_s3 + $0x4] sm:$0xf]  ;;  %v2590_v12 = vld [vmem:[%s5182_s3 + $0x10] sm:$0xf0] }
  0x62   :  { %1618 = vmatpush.bf16.msra.mxu3 %v2717_v38  ;;  %1602 = vmatpush.bf16.msra.mxu2 %v2621_v20  ;;  %v3459_v13 = vld [vmem:[%s5182_s3 + $0x264] sm:$0xf]  ;;  %v2894_v14 = vld [vmem:[%s5182_s3 + $0x270] sm:$0xf0]  ;;  %v3132_v21 = vld [vmem:[%s5182_s3 + $0x440] sm:$0xf] }
  0x63   :  { %684 = vmatmul.bf16.vlgmr.msra.gmra.mxu0 %v3882_v50  ;;  %v3465_v50 = vld [vmem:[%s5182_s3 + $0x28c] sm:$0xf0]  ;;  %v3495_v18 = vld [vmem:[%s5182_s3 + $0x384] sm:$0xf]  ;;  %v3038_v19 = vld [vmem:[%s5182_s3 + $0x390] sm:$0xf0] }
  0x64   :  { %1625 = vmatpush.bf16.msrb.mxu0 %v2957_v30  ;;  %698 = vmatmul.bf16.vlgmr.msra.gmra.mxu1 %v3899_v57  ;;  %v2909_v49 = vor.u32 %v3465_v50, %v2908_v47  ;;  %v2892_v57 = vld [vmem:[%s5182_s3 + $0x260] sm:$0xf]  ;;  %v3485_v30 = vld [vmem:[%s5182_s3 + $0x32c] sm:$0xf0]  ;;  %v3041_v20 = vor.u32 %v3495_v18, %v3038_v19  ;;  %v3455_v23 = vld [vmem:[%s5182_s3 + $0x244] sm:$0xf] }
  0x65   :  { %1639 = vmatpush.bf16.msrb.mxu1 %v3085_v35  ;;  %v2893_v52 = vor.u32 %v3461_v51, %v2892_v57  ;;  %v2989_v31 = vor.u32 %v3485_v30, %v2988_v28  ;;  %v3395_v35 = vld [vmem:[%s5182_s3 + $0x64] sm:$0xf]  ;;  %v2588_v47 = vld [vmem:[%s5182_s3] sm:$0xf]  ;;  %v3385_v50 = vld [vmem:[%s5182_s3 + $0xc] sm:$0xf0] }
  0x66   :  { %1667 = vmatpush.bf16.msrb.mxu3 %v2705_v39  ;;  %v2641_v38 = vor.u32 %v3395_v35, %v2638_v36  ;;  %v2942_v39 = vld [vmem:[%s5182_s3 + $0x2d0] sm:$0xf0]  ;;  %1603 = vmatpush.bf16.msra.mxu2 %v2605_v34  ;;  %v3467_v51 = vld [vmem:[%s5182_s3 + $0x2a4] sm:$0xf]  ;;  %v3521_v22 = vld [vmem:[%s5182_s3 + $0x44c] sm:$0xf0] }
  0x67   :  { %v2945_v42 = vor.u32 %v3471_v37, %v2942_v39  ;;  %v2622_v57 = vld [vmem:[%s5182_s3 + $0x50] sm:$0xf0]  ;;  %v3116_v34 = vld [vmem:[%s5182_s3 + $0x420] sm:$0xf]  ;;  %v3517_v35 = vld [vmem:[%s5182_s3 + $0x42c] sm:$0xf0] }
  0x68   :  { %1626 = vmatpush.bf16.msrb.mxu0 %v2941_v40  ;;  %v2972_v40 = vld [vmem:[%s5182_s3 + $0x300] sm:$0xf]  ;;  %v2878_v26 = vld [vmem:[%s5182_s3 + $0x250] sm:$0xf0]  ;;  %v3451_v36 = vld [vmem:[%s5182_s3 + $0x224] sm:$0xf] }
  0x69   :  { %1640 = vmatpush.bf16.msrb.mxu1 %v3069_v43  ;;  %v2973_v43 = vor.u32 %v3481_v41, %v2972_v40  ;;  %v2881_v28 = vor.u32 %v3455_v23, %v2878_v26  ;;  %v3022_v30 = vld [vmem:[%s5182_s3 + $0x370] sm:$0xf0]  ;;  %v3117_v40 = vor.u32 %v3517_v35, %v3116_v34  ;;  %v3523_v2 = vld [vmem:[%s5182_s3 + $0x464] sm:$0xf]  ;;  %vm1593_vm0 = vcmask 523264   ;;  %s2254_s21 = sshll.u32 %s5188_s9, 4  ;;  %s2255_s21 = int_to_ptr.hbm [resolvable:$true] %s2254_s21 }
  0x6a   :  { %1668 = vmatpush.bf16.msrb.mxu3 %v2689_v1  ;;  %v2913_v1 = vor.u32 %v3463_v61, %v2910_v63  ;;  %v2862_v41 = vld [vmem:[%s5182_s3 + $0x230] sm:$0xf0]  ;;  %v3435_v19 = vld [vmem:[%s5182_s3 + $0x1a4] sm:$0xf]  ;;  %vm2228_vm1 = vcmask 261120   ;;  %s3593_s22 = smov 128  }
  0x6b   :  { %v3150_v3 = vld [vmem:[%s5182_s3 + $0x470] sm:$0xf0]  ;;  %v3515_v23 = vld [vmem:[%s5182_s3 + $0x424] sm:$0xf]  ;;  %s3594_s23 = smov 8  }
  0x6c   :  { %1627 = vmatpush.bf16.msrb.mxu0 %v2925_v46  ;;  %v3089_v46 = vor.u32 %v3507_v44, %v3086_v45  ;;  %v3487_v44 = vld [vmem:[%s5182_s3 + $0x344] sm:$0xf]  ;;  %v3006_v45 = vld [vmem:[%s5182_s3 + $0x350] sm:$0xf0] }
  0x6d   :  { %1641 = vmatpush.bf16.msrb.mxu1 %v3053_v48  ;;  %v3391_v48 = vld [vmem:[%s5182_s3 + $0x44] sm:$0xf]  ;;  %v3134_v18 = vld [vmem:[%s5182_s3 + $0x450] sm:$0xf0] }
  0x6e   :  { %1669 = vmatpush.bf16.msrb.mxu3 %v2673_v15  ;;  %v2625_v53 = vor.u32 %v3391_v48, %v2622_v57  ;;  %v2593_v15 = vor.u32 %v3383_v8, %v2590_v12  ;;  %v3100_v48 = vld [vmem:[%s5182_s3 + $0x400] sm:$0xf]  ;;  %v3447_v57 = vld [vmem:[%s5182_s3 + $0x204] sm:$0xf]  ;;  %v2782_v26 = vld [vmem:[%s5182_s3 + $0x190] sm:$0xf0] }
  0x6f   :  { %v3439_v8 = vld [vmem:[%s5182_s3 + $0x1c4] sm:$0xf]  ;;  %v2766_v34 = vld [vmem:[%s5182_s3 + $0x170] sm:$0xf0] }
  0x70   :  { %1628 = vmatpush.bf16.msrb.mxu0 %v2909_v49  ;;  %v2589_v49 = vor.u32 %v3385_v50, %v2588_v47  ;;  %v3009_v47 = vor.u32 %v3487_v44, %v3006_v45 }
  0x71   :  { %1642 = vmatpush.bf16.msrb.mxu1 %v3037_v55  ;;  %v3503_v55 = vld [vmem:[%s5182_s3 + $0x3c4] sm:$0xf] }
  0x72   :  { %1670 = vmatpush.bf16.msrb.mxu3 %v2657_v25  ;;  %1604 = vmatpush.bf16.msra.mxu2 %v2589_v49  ;;  %v3073_v58 = vor.u32 %v3503_v55, %v3070_v56  ;;  %v3133_v25 = vor.u32 %v3521_v22, %v3132_v21  ;;  %v3513_v49 = vld [vmem:[%s5182_s3 + $0x40c] sm:$0xf0]  ;;  %v2830_v55 = vld [vmem:[%s5182_s3 + $0x1f0] sm:$0xf0] }
  0x74   :  { %1629 = vmatpush.bf16.msrb.mxu0 %v2893_v52  ;;  %v2926_v52 = vld [vmem:[%s5182_s3 + $0x2b0] sm:$0xf0] }
  0x75   :  { %1643 = vmatpush.bf16.msrb.mxu1 %v3021_v4  ;;  %v2929_v54 = vor.u32 %v3467_v51, %v2926_v52  ;;  %v3101_v52 = vor.u32 %v3513_v49, %v3100_v48  ;;  %v3442_v49 = vld [vmem:[%s5182_s3 + $0x1d4] sm:$0xf0] }
  0x76   :  { %1671 = vmatpush.bf16.msrb.mxu3 %v2641_v38 }
  0x78   :  { %1630 = vmatpush.bf16.msrb.mxu0 %v2877_v0  ;;  %v4424_v0 = vld [vmem:[%s5181_s2] sm:$0x1f]  ;;  %s3592_s2 = smov [#allocation2]  }
  0x79   :  { %1644 = vmatpush.bf16.msrb.mxu1 %v3005_v16  ;;  %v138_v4 = vperm.slane %v4424_v0, 0  ;;  %v2897_v16 = vor.u32 %v3459_v13, %v2894_v14  ;;  %v3153_v14 = vor.u32 %v3523_v2, %v3150_v3  ;;  %v3438_v2 = vld [vmem:[%s5182_s3 + $0x1b4] sm:$0xf0]  ;;  %v3415_v3 = vld [vmem:[%s5182_s3 + $0x104] sm:$0xf]  ;;  %s2252_s19 = sshll.u32 %s3592_s2, 4  ;;  %s2253_s19 = int_to_ptr.vmem [resolvable:$true] %s2252_s19 }
  0x7a   :  { %1672 = vmatpush.bf16.msrb.mxu3 %v2625_v53  ;;  %v2846_v53 = vld [vmem:[%s5182_s3 + $0x210] sm:$0xf0] }
  0x7b   :  { %v2849_v59 = vor.u32 %v3447_v57, %v2846_v53  ;;  %v3419_v57 = vld [vmem:[%s5182_s3 + $0x124] sm:$0xf] }
  0x7c   :  { %1631 = vmatpush.bf16.msrb.mxu0 %v2861_v11  ;;  %v3149_v11 = vor.u32 %v3525_v7, %v3148_v6 }
  0x7d   :  { %1645 = vmatpush.bf16.msrb.mxu1 %v2989_v31 }
  0x7e   :  { %1673 = vmatpush.bf16.msrb.mxu3 %v2609_v62  ;;  %1657 = vmatpush.bf16.msrb.mxu2 %v3149_v11  ;;  %v3483_v62 = vld [vmem:[%s5182_s3 + $0x324] sm:$0xf]  ;;  %v2974_v11 = vld [vmem:[%s5182_s3 + $0x310] sm:$0xf0] }
  0x80   :  { %1632 = vmatpush.bf16.msrb.mxu0 %v2845_v24  ;;  %v139_v24 = vperm.slane %v4424_v0, 1 }
  0x81   :  { %1646 = vmatpush.bf16.msrb.mxu1 %v2973_v43  ;;  %v2865_v43 = vor.u32 %v3451_v36, %v2862_v41  ;;  %v3423_v41 = vld [vmem:[%s5182_s3 + $0x144] sm:$0xf] }
  0x82   :  { %1674 = vmatpush.bf16.msrb.mxu3 %v2593_v15  ;;  %1658 = vmatpush.bf16.msrb.mxu2 %v3133_v25  ;;  %v3519_v15 = vld [vmem:[%s5182_s3 + $0x444] sm:$0xf] }
  0x83   :  { %v3137_v22 = vor.u32 %v3519_v15, %v3134_v18  ;;  %v3431_v25 = vld [vmem:[%s5182_s3 + $0x184] sm:$0xf]  ;;  %v2788_v15 = vld [vmem:[%s5182_s3 + $0x188] sm:$0xf] }
  0x84   :  { %1695 = vmatpush.bf16.msra.mxu0 %v2961_v29  ;;  %v3491_v29 = vld [vmem:[%s5182_s3 + $0x364] sm:$0xf] }
  0x85   :  { %1709 = vmatpush.bf16.msra.mxu1 %v3089_v46  ;;  %v3025_v32 = vor.u32 %v3491_v29, %v3022_v30  ;;  %v3511_v30 = vld [vmem:[%s5182_s3 + $0x404] sm:$0xf] }
  0x86   :  { %1659 = vmatpush.bf16.msrb.mxu2 %v3117_v40  ;;  %v3446_v40 = vld [vmem:[%s5182_s3 + $0x1f4] sm:$0xf0] }
  0x88   :  { %1696 = vmatpush.bf16.msra.mxu0 %v2945_v42 }
  0x89   :  { %1710 = vmatpush.bf16.msra.mxu1 %v3073_v58 }
  0x8a   :  { %1660 = vmatpush.bf16.msrb.mxu2 %v3101_v52 }
  0x8c   :  { %1697 = vmatpush.bf16.msra.mxu0 %v2929_v54  ;;  %v3443_v54 = vld [vmem:[%s5182_s3 + $0x1e4] sm:$0xf] }
  0x8d   :  { %1711 = vmatpush.bf16.msra.mxu1 %v3057_v5  ;;  %v2833_v61 = vor.u32 %v3443_v54, %v2830_v55 }
  0x90   :  { %1698 = vmatpush.bf16.msra.mxu0 %v2913_v1 }
  0x91   :  { %1712 = vmatpush.bf16.msra.mxu1 %v3041_v20  ;;  %v2798_v20 = vld [vmem:[%s5182_s3 + $0x1b0] sm:$0xf0] }
  0x92   :  { %v2801_v21 = vor.u32 %v3435_v19, %v2798_v20 }
  0x94   :  { %1699 = vmatpush.bf16.msra.mxu0 %v2897_v16 }
  0x95   :  { %1713 = vmatpush.bf16.msra.mxu1 %v3025_v32  ;;  %v3102_v32 = vld [vmem:[%s5182_s3 + $0x410] sm:$0xf0] }
  0x98   :  { %1700 = vmatpush.bf16.msra.mxu0 %v2881_v28  ;;  %v140_v28 = vperm.slane %v4424_v0, 2 }
  0x99   :  { %1714 = vmatpush.bf16.msra.mxu1 %v3009_v47 }
  0x9c   :  { %1701 = vmatpush.bf16.msra.mxu0 %v2865_v43  ;;  %v141_v43 = vperm.slane %v4424_v0, 3 }
  0xa0   :  { %v573_v9 = vpop.f32.mrf.mxu0  ;;  %1702 = vmatpush.bf16.msra.mxu0 %v2849_v59 }
  0xa1   :  { %v574_v17 = vadd.f32 %v573_v9, %v138_v4  ;;  %v2814_v9 = vld [vmem:[%s5182_s3 + $0x1d0] sm:$0xf0] }
  0xa2   :  { %v2817_v13 = vor.u32 %v3439_v8, %v2814_v9 }
  0xa3   :  { %v587_v10 = vpop.f32.mrf.mxu1 }
  0xa4   :  { %v588_v31 = vadd.f32 %v587_v10, %v574_v17  ;;  %v3479_v10 = vld [vmem:[%s5182_s3 + $0x304] sm:$0xf] }
  0xa5   :  { %v2977_v16 = vor.u32 %v3479_v10, %v2974_v11  ;;  %v2948_v11 = vld [vmem:[%s5182_s3 + $0x2c8] sm:$0xf] }
  0xa6   :  { %v704_v46 = vmax.f32 %v588_v31, 0.0 }
  0xa7   :  { %v601_v27 = vpop.f32.mrf.mxu2 }
  0xa8   :  { %v602_v37 = vadd.f32 %v601_v27, %v139_v24  ;;  %v575_v38 = vpop.f32.mrf.mxu0  ;;  %v2785_v27 = vor.u32 %v3431_v25, %v2782_v26  ;;  %v3470_v25 = vld [vmem:[%s5182_s3 + $0x2b4] sm:$0xf0] }
  0xa9   :  { %v576_v42 = vadd.f32 %v575_v38, %v138_v4  ;;  %v2990_v4 = vld [vmem:[%s5182_s3 + $0x330] sm:$0xf0]  ;;  %v3105_v38 = vor.u32 %v3511_v30, %v3102_v32 }
  0xaa   :  { %v615_v33 = vpop.f32.mrf.mxu3  ;;  %v2993_v7 = vor.u32 %v3483_v62, %v2990_v4  ;;  %v2718_v4 = vld [vmem:[%s5182_s3 + $0x110] sm:$0xf0] }
  0xab   :  { %v589_v39 = vpop.f32.mrf.mxu1  ;;  %v616_v51 = vadd.f32 %v615_v33, %v602_v37  ;;  %v3427_v33 = vld [vmem:[%s5182_s3 + $0x164] sm:$0xf]  ;;  %v2721_v8 = vor.u32 %v3415_v3, %v2718_v4  ;;  %v2868_v3 = vld [vmem:[%s5182_s3 + $0x228] sm:$0xf]  ;;  %v3454_v4 = vld [vmem:[%s5182_s3 + $0x234] sm:$0xf0] }
  0xac   :  { %v590_v50 = vadd.f32 %v589_v39, %v576_v42  ;;  %1715 = vmatpush.bf16.msra.mxu1 %v2993_v7  ;;  %v2769_v36 = vor.u32 %v3427_v33, %v2766_v34  ;;  %v2836_v39 = vld [vmem:[%s5182_s3 + $0x1e8] sm:$0xf]  ;;  %v2750_v42 = vld [vmem:[%s5182_s3 + $0x150] sm:$0xf0]  ;;  %v3506_v34 = vld [vmem:[%s5182_s3 + $0x3d4] sm:$0xf0] }
  0xad   :  { %v705_v5 = vmax.f32 %v616_v51, 0.0  ;;  %v2753_v44 = vor.u32 %v3423_v41, %v2750_v42  ;;  %v2837_v47 = vor.u32 %v3446_v40, %v2836_v39  ;;  %v2734_v51 = vld [vmem:[%s5182_s3 + $0x130] sm:$0xf0]  ;;  %v3076_v33 = vld [vmem:[%s5182_s3 + $0x3c8] sm:$0xf] }
  0xae   :  { %v709_v58 = vmax.f32 %v590_v50, 0.0  ;;  %v2820_v50 = vld [vmem:[%s5182_s3 + $0x1c8] sm:$0xf]  ;;  %v3426_v39 = vld [vmem:[%s5182_s3 + $0x154] sm:$0xf0]  ;;  %v3077_v40 = vor.u32 %v3506_v34, %v3076_v33 }
  0xaf   :  { %v603_v56 = vpop.f32.mrf.mxu2  ;;  %v2821_v62 = vor.u32 %v3442_v49, %v2820_v50  ;;  %v3060_v42 = vld [vmem:[%s5182_s3 + $0x3a8] sm:$0xf]  ;;  %v3422_v50 = vld [vmem:[%s5182_s3 + $0x134] sm:$0xf0] }
  0xb0   :  { %v604_v60 = vadd.f32 %v603_v56, %v139_v24  ;;  %v4515_v1 = vpack.c.bf16 %v709_v58, %v704_v46  ;;  %1716 = vmatpush.bf16.msra.mxu1 %v2977_v16  ;;  %v3118_v24 = vld [vmem:[%s5182_s3 + $0x430] sm:$0xf0]  ;;  %v2964_v56 = vld [vmem:[%s5182_s3 + $0x2e8] sm:$0xf]  ;;  %v2737_v58 = vor.u32 %v3419_v57, %v2734_v51  ;;  %v3434_v16 = vld [vmem:[%s5182_s3 + $0x194] sm:$0xf0] }
  0xb1   :  { %v3121_v29 = vor.u32 %v3515_v23, %v3118_v24  ;;  %v3510_v23 = vld [vmem:[%s5182_s3 + $0x3f4] sm:$0xf0]  ;;  %v2932_v24 = vld [vmem:[%s5182_s3 + $0x2a8] sm:$0xf]  ;;  %v2789_v26 = vor.u32 %v3434_v16, %v2788_v15 }
  0xb2   :  { %v617_v63 = vpop.f32.mrf.mxu3  ;;  %1605 = vmatmul.bf16.vlgmr.msra.gmra.mxu2 %v4515_v1  ;;  %v2933_v32 = vor.u32 %v3470_v25, %v2932_v24  ;;  %v3044_v51 = vld [vmem:[%s5182_s3 + $0x388] sm:$0xf]  ;;  %v3450_v15 = vld [vmem:[%s5182_s3 + $0x214] sm:$0xf0] }
  0xb3   :  { %v618_v6 = vadd.f32 %v617_v63, %v604_v60  ;;  %1681 = vmatpush.bf16.msra.mxu2 %v2833_v61  ;;  %v3478_v61 = vld [vmem:[%s5182_s3 + $0x2f4] sm:$0xf0]  ;;  %v2804_v63 = vld [vmem:[%s5182_s3 + $0x1a8] sm:$0xf] }
  0xb4   :  { %v2965_v7 = vor.u32 %v3478_v61, %v2964_v56  ;;  %v3458_v56 = vld [vmem:[%s5182_s3 + $0x254] sm:$0xf0]  ;;  %v2996_v24 = vld [vmem:[%s5182_s3 + $0x328] sm:$0xf] }
  0xb5   :  { %v710_v12 = vmax.f32 %v618_v6, 0.0  ;;  %v2692_v34 = vld [vmem:[%s5182_s3 + $0xc8] sm:$0xf] }
  0xb7   :  { %v4542_v17 = vpack.c.bf16 %v710_v12, %v705_v5  ;;  %1682 = vmatpush.bf16.msra.mxu2 %v2817_v13  ;;  %v3474_v12 = vld [vmem:[%s5182_s3 + $0x2d4] sm:$0xf0]  ;;  %v2805_v13 = vor.u32 %v3438_v2, %v2804_v63 }
  0xb8   :  { %v3494_v63 = vld [vmem:[%s5182_s3 + $0x374] sm:$0xf0] }
  0xb9   :  { %1619 = vmatmul.bf16.vlgmr.msra.gmra.mxu3 %v4542_v17 }
  0xba   :  { %1727 = vmatpush.bf16.msra.mxu3 %v3153_v14 }
  0xbb   :  { %1683 = vmatpush.bf16.msra.mxu2 %v2801_v21  ;;  %v2949_v21 = vor.u32 %v3474_v12, %v2948_v11  ;;  %v3490_v11 = vld [vmem:[%s5182_s3 + $0x354] sm:$0xf0] }
  0xbe   :  { %1728 = vmatpush.bf16.msra.mxu3 %v3137_v22  ;;  %v3092_v22 = vld [vmem:[%s5182_s3 + $0x3e8] sm:$0xf] }
  0xbf   :  { %1684 = vmatpush.bf16.msra.mxu2 %v2785_v27  ;;  %v3093_v30 = vor.u32 %v3510_v23, %v3092_v22  ;;  %v3444_v22 = vld [vmem:[%s5182_s3 + $0x1ec] sm:$0xf]  ;;  %v2838_v23 = vld [vmem:[%s5182_s3 + $0x1f8] sm:$0xf0] }
  0xc0   :  { %v629_v31 = vpop.f32.mrf.mxu0  ;;  %v2841_v33 = vor.u32 %v3444_v22, %v2838_v23  ;;  %v2918_v22 = vld [vmem:[%s5182_s3 + $0x298] sm:$0xf0] }
  0xc1   :  { %v630_v37 = vadd.f32 %v629_v31, %v140_v28 }
  0xc2   :  { %1729 = vmatpush.bf16.msra.mxu3 %v3121_v29  ;;  %v3430_v29 = vld [vmem:[%s5182_s3 + $0x174] sm:$0xf0] }
  0xc3   :  { %v643_v35 = vpop.f32.mrf.mxu1  ;;  %1685 = vmatpush.bf16.msra.mxu2 %v2769_v36  ;;  %v3466_v36 = vld [vmem:[%s5182_s3 + $0x294] sm:$0xf0] }
  0xc4   :  { %v644_v45 = vadd.f32 %v643_v35, %v630_v37  ;;  %v2916_v35 = vld [vmem:[%s5182_s3 + $0x288] sm:$0xf] }
  0xc5   :  { %v2917_v41 = vor.u32 %v3466_v36, %v2916_v35  ;;  %v3410_v35 = vld [vmem:[%s5182_s3 + $0xd4] sm:$0xf0] }
  0xc6   :  { %1730 = vmatpush.bf16.msra.mxu3 %v3105_v38  ;;  %v706_v59 = vmax.f32 %v644_v45, 0.0  ;;  %v2756_v38 = vld [vmem:[%s5182_s3 + $0x148] sm:$0xf]  ;;  %v3462_v45 = vld [vmem:[%s5182_s3 + $0x274] sm:$0xf0] }
  0xc7   :  { %v657_v46 = vpop.f32.mrf.mxu2  ;;  %1686 = vmatpush.bf16.msra.mxu2 %v2753_v44  ;;  %v2900_v44 = vld [vmem:[%s5182_s3 + $0x268] sm:$0xf] }
  0xc8   :  { %v631_v48 = vpop.f32.mrf.mxu0  ;;  %v671_v53 = vpop.f32.mrf.mxu3  ;;  %v658_v55 = vadd.f32 %v657_v46, %v141_v43  ;;  %v2757_v46 = vor.u32 %v3426_v39, %v2756_v38  ;;  %v2901_v57 = vor.u32 %v3462_v45, %v2900_v44  ;;  %v3440_v39 = vld [vmem:[%s5182_s3 + $0x1cc] sm:$0xf]  ;;  %v2694_v44 = vld [vmem:[%s5182_s3 + $0xd8] sm:$0xf0] }
  0xc9   :  { %v632_v52 = vadd.f32 %v631_v48, %v140_v28  ;;  %1675 = vmatmul.bf16.vlgmr.msrb.gmra.mxu3 %v4515_v1  ;;  %v2772_v28 = vld [vmem:[%s5182_s3 + $0x168] sm:$0xf]  ;;  %v3476_v45 = vld [vmem:[%s5182_s3 + $0x2ec] sm:$0xf] }
  0xca   :  { %1751 = vmatpush.bf16.msrb.mxu3 %v2837_v47  ;;  %v672_v6 = vadd.f32 %v671_v53, %v658_v55  ;;  %v2773_v37 = vor.u32 %v3430_v29, %v2772_v28  ;;  %v2740_v47 = vld [vmem:[%s5182_s3 + $0x128] sm:$0xf]  ;;  %v142_v53 = vperm.slane %v4424_v0, 4  ;;  %v2710_v28 = vld [vmem:[%s5182_s3 + $0xf8] sm:$0xf0] }
  0xcb   :  { %v645_v54 = vpop.f32.mrf.mxu1  ;;  %1687 = vmatpush.bf16.msra.mxu2 %v2737_v58  ;;  %v2884_v55 = vld [vmem:[%s5182_s3 + $0x248] sm:$0xf]  ;;  %v2741_v58 = vor.u32 %v3422_v50, %v2740_v47  ;;  %v2693_v47 = vor.u32 %v3410_v35, %v2692_v34  ;;  %v3460_v34 = vld [vmem:[%s5182_s3 + $0x26c] sm:$0xf]  ;;  %v2902_v35 = vld [vmem:[%s5182_s3 + $0x278] sm:$0xf0] }
  0xcc   :  { %v646_v60 = vadd.f32 %v645_v54, %v632_v52  ;;  %v707_v19 = vmax.f32 %v672_v6, 0.0  ;;  %v3498_v52 = vld [vmem:[%s5182_s3 + $0x394] sm:$0xf0]  ;;  %v2885_v61 = vor.u32 %v3458_v56, %v2884_v55  ;;  %v3404_v55 = vld [vmem:[%s5182_s3 + $0xac] sm:$0xf] }
  0xcd   :  { %v3045_v0 = vor.u32 %v3498_v52, %v3044_v51  ;;  %v3406_v51 = vld [vmem:[%s5182_s3 + $0xb4] sm:$0xf0]  ;;  %v3436_v52 = vld [vmem:[%s5182_s3 + $0x1ac] sm:$0xf]  ;;  %v2678_v56 = vld [vmem:[%s5182_s3 + $0xb8] sm:$0xf0] }
  0xce   :  { %v711_v5 = vmax.f32 %v646_v60, 0.0  ;;  %1752 = vmatpush.bf16.msrb.mxu3 %v2821_v62  ;;  %v3418_v60 = vld [vmem:[%s5182_s3 + $0x114] sm:$0xf0]  ;;  %v3028_v62 = vld [vmem:[%s5182_s3 + $0x368] sm:$0xf] }
  0xcf   :  { %v659_v10 = vpop.f32.mrf.mxu2  ;;  %1688 = vmatpush.bf16.msra.mxu2 %v2721_v8  ;;  %v3029_v6 = vor.u32 %v3494_v63, %v3028_v62  ;;  %v2869_v8 = vor.u32 %v3454_v4, %v2868_v3  ;;  %v2681_v62 = vor.u32 %v3404_v55, %v2678_v56  ;;  %v3402_v63 = vld [vmem:[%s5182_s3 + $0x94] sm:$0xf0]  ;;  %v2790_v3 = vld [vmem:[%s5182_s3 + $0x198] sm:$0xf0]  ;;  %v3156_v55 = vld [vmem:[%s5182_s3 + $0x468] sm:$0xf] }
  0xd0   :  { %v4623_v9 = vpack.c.bf16 %v711_v5, %v706_v59  ;;  %v660_v14 = vadd.f32 %v659_v10, %v141_v43  ;;  %v673_v18 = vpop.f32.mrf.mxu3  ;;  %v3502_v43 = vld [vmem:[%s5182_s3 + $0x3b4] sm:$0xf0]  ;;  %v2724_v59 = vld [vmem:[%s5182_s3 + $0x108] sm:$0xf] }
  0xd1   :  { %v3061_v48 = vor.u32 %v3502_v43, %v3060_v42  ;;  %v2725_v5 = vor.u32 %v3418_v60, %v2724_v59  ;;  %v3012_v10 = vld [vmem:[%s5182_s3 + $0x348] sm:$0xf]  ;;  %v3482_v42 = vld [vmem:[%s5182_s3 + $0x314] sm:$0xf0]  ;;  %v3408_v43 = vld [vmem:[%s5182_s3 + $0xcc] sm:$0xf] }
  0xd2   :  { %1633 = vmatmul.bf16.vlgmr.msrb.gmra.mxu0 %v4623_v9  ;;  %v674_v20 = vadd.f32 %v673_v18, %v660_v14  ;;  %1753 = vmatpush.bf16.msrb.mxu3 %v2805_v13  ;;  %v2852_v14 = vld [vmem:[%s5182_s3 + $0x208] sm:$0xf]  ;;  %v2950_v59 = vld [vmem:[%s5182_s3 + $0x2d8] sm:$0xf0]  ;;  %v3526_v56 = vld [vmem:[%s5182_s3 + $0x474] sm:$0xf0] }
  0xd3   :  { %1765 = vmatpush.bf16.msrb.mxu0 %v2965_v7  ;;  %v2708_v18 = vld [vmem:[%s5182_s3 + $0xe8] sm:$0xf]  ;;  %v2853_v25 = vor.u32 %v3450_v15, %v2852_v14  ;;  %v3398_v14 = vld [vmem:[%s5182_s3 + $0x74] sm:$0xf0]  ;;  %v3428_v15 = vld [vmem:[%s5182_s3 + $0x16c] sm:$0xf] }
  0xd4   :  { %v712_v27 = vmax.f32 %v674_v20, 0.0 }
  0xd6   :  { %v4656_v31 = vpack.c.bf16 %v712_v27, %v707_v19  ;;  %1754 = vmatpush.bf16.msrb.mxu3 %v2789_v26  ;;  %v3414_v19 = vld [vmem:[%s5182_s3 + $0xf4] sm:$0xf0]  ;;  %v3412_v27 = vld [vmem:[%s5182_s3 + $0xec] sm:$0xf] }
  0xd7   :  { %1766 = vmatpush.bf16.msrb.mxu0 %v2949_v21  ;;  %v3013_v21 = vor.u32 %v3490_v11, %v3012_v10  ;;  %v3486_v26 = vld [vmem:[%s5182_s3 + $0x334] sm:$0xf0]  ;;  %v2713_v38 = vor.u32 %v3412_v27, %v2710_v28  ;;  %v3424_v28 = vld [vmem:[%s5182_s3 + $0x14c] sm:$0xf] }
  0xd8   :  { %1647 = vmatmul.bf16.vlgmr.msrb.gmra.mxu1 %v4656_v31  ;;  %v3394_v27 = vld [vmem:[%s5182_s3 + $0x54] sm:$0xf0] }
  0xd9   :  { %1779 = vmatpush.bf16.msrb.mxu1 %v3093_v30 }
  0xda   :  { %1755 = vmatpush.bf16.msrb.mxu3 %v2773_v37  ;;  %v2997_v37 = vor.u32 %v3486_v26, %v2996_v24 }
  0xdb   :  { %1767 = vmatpush.bf16.msrb.mxu0 %v2933_v32  ;;  %v2709_v32 = vor.u32 %v3414_v19, %v2708_v18  ;;  %v3396_v19 = vld [vmem:[%s5182_s3 + $0x6c] sm:$0xf] }
  0xdd   :  { %1780 = vmatpush.bf16.msrb.mxu1 %v3077_v40  ;;  %v2822_v40 = vld [vmem:[%s5182_s3 + $0x1d8] sm:$0xf0] }
  0xde   :  { %1756 = vmatpush.bf16.msrb.mxu3 %v2757_v46  ;;  %v2966_v46 = vld [vmem:[%s5182_s3 + $0x2f8] sm:$0xf0]  ;;  %v2825_v50 = vor.u32 %v3440_v39, %v2822_v40  ;;  %v2612_v39 = vld [vmem:[%s5182_s3 + $0x28] sm:$0xf] }
  0xdf   :  { %1768 = vmatpush.bf16.msrb.mxu0 %v2917_v41  ;;  %v2980_v41 = vld [vmem:[%s5182_s3 + $0x308] sm:$0xf] }
  0xe0   :  { %v685_v49 = vpop.f32.mrf.mxu0 }
  0xe1   :  { %v699_v54 = vpop.f32.mrf.mxu1  ;;  %1781 = vmatpush.bf16.msrb.mxu1 %v3061_v48  ;;  %v686_v2 = vadd.f32 %v685_v49, %v142_v53  ;;  %v2676_v48 = vld [vmem:[%s5182_s3 + $0xa8] sm:$0xf]  ;;  %v2981_v49 = vor.u32 %v3482_v42, %v2980_v41  ;;  %v3390_v41 = vld [vmem:[%s5182_s3 + $0x34] sm:$0xf0]  ;;  %v3420_v42 = vld [vmem:[%s5182_s3 + $0x12c] sm:$0xf] }
  0xe2   :  { %1703 = vmatmul.bf16.vlgmr.msra.gmra.mxu0 %v4623_v9  ;;  %1757 = vmatpush.bf16.msrb.mxu3 %v2741_v58  ;;  %v3472_v58 = vld [vmem:[%s5182_s3 + $0x2cc] sm:$0xf]  ;;  %v2677_v60 = vor.u32 %v3406_v51, %v2676_v48  ;;  %v2613_v48 = vor.u32 %v3390_v41, %v2612_v39  ;;  %v3386_v51 = vld [vmem:[%s5182_s3 + $0x14] sm:$0xf0] }
  0xe3   :  { %1769 = vmatpush.bf16.msrb.mxu0 %v2901_v57  ;;  %v700_v12 = vadd.f32 %v699_v54, %v686_v2  ;;  %v2697_v57 = vor.u32 %v3408_v43, %v2694_v44  ;;  %v2969_v54 = vor.u32 %v3476_v45, %v2966_v46  ;;  %v3432_v2 = vld [vmem:[%s5182_s3 + $0x18c] sm:$0xf]  ;;  %v2953_v4 = vor.u32 %v3472_v58, %v2950_v59  ;;  %v2742_v43 = vld [vmem:[%s5182_s3 + $0x138] sm:$0xf0] }
  0xe4   :  { %v2793_v11 = vor.u32 %v3432_v2, %v2790_v3  ;;  %v2905_v44 = vor.u32 %v3460_v34, %v2902_v35  ;;  %v3388_v45 = vld [vmem:[%s5182_s3 + $0x2c] sm:$0xf]  ;;  %v2614_v46 = vld [vmem:[%s5182_s3 + $0x38] sm:$0xf0] }
  0xe5   :  { %1782 = vmatpush.bf16.msrb.mxu1 %v3045_v0  ;;  %v708_v29 = vmax.f32 %v700_v12, 0.0  ;;  %v2644_v12 = vld [vmem:[%s5182_s3 + $0x68] sm:$0xf]  ;;  %v3384_v59 = vld [vmem:[%s5182_s3 + $0xc] sm:$0xf] }
  0xe6   :  { %1758 = vmatpush.bf16.msrb.mxu3 %v2725_v5  ;;  %v3400_v5 = vld [vmem:[%s5182_s3 + $0x8c] sm:$0xf]  ;;  %v2645_v23 = vor.u32 %v3398_v14, %v2644_v12  ;;  %v2854_v12 = vld [vmem:[%s5182_s3 + $0x218] sm:$0xf0] }
  0xe7   :  { %1770 = vmatpush.bf16.msrb.mxu0 %v2885_v61  ;;  %v2660_v61 = vld [vmem:[%s5182_s3 + $0x88] sm:$0xf]  ;;  %v3142_v14 = vld [vmem:[%s5182_s3 + $0x458] sm:$0xf0]  ;;  %v3496_v39 = vld [vmem:[%s5182_s3 + $0x38c] sm:$0xf] }
  0xe8   :  { %v687_v7 = vpop.f32.mrf.mxu0  ;;  %1717 = vmatmul.bf16.vlgmr.msra.gmra.mxu1 %v4656_v31  ;;  %v2661_v10 = vor.u32 %v3402_v63, %v2660_v61  ;;  %v2870_v61 = vld [vmem:[%s5182_s3 + $0x238] sm:$0xf0] }
  0xe9   :  { %v688_v13 = vadd.f32 %v687_v7, %v142_v53  ;;  %v701_v16 = vpop.f32.mrf.mxu1  ;;  %1783 = vmatpush.bf16.msrb.mxu1 %v3029_v6  ;;  %v2806_v53 = vld [vmem:[%s5182_s3 + $0x1b8] sm:$0xf0]  ;;  %v3468_v7 = vld [vmem:[%s5182_s3 + $0x2ac] sm:$0xf] }
  0xea   :  { %v2809_v0 = vor.u32 %v3436_v52, %v2806_v53  ;;  %v2662_v6 = vld [vmem:[%s5182_s3 + $0x98] sm:$0xf0]  ;;  %v3416_v52 = vld [vmem:[%s5182_s3 + $0x10c] sm:$0xf]  ;;  %v2617_v53 = vor.u32 %v3388_v45, %v2614_v46 }
  0xeb   :  { %v702_v20 = vadd.f32 %v701_v16, %v688_v13  ;;  %1771 = vmatpush.bf16.msrb.mxu0 %v2869_v8  ;;  %v2934_v8 = vld [vmem:[%s5182_s3 + $0x2b8] sm:$0xf0]  ;;  %v2665_v13 = vor.u32 %v3400_v5, %v2662_v6  ;;  %v3488_v45 = vld [vmem:[%s5182_s3 + $0x34c] sm:$0xf] }
  0xec   :  { %v2774_v16 = vld [vmem:[%s5182_s3 + $0x178] sm:$0xf0]  ;;  %v2937_v18 = vor.u32 %v3468_v7, %v2934_v8  ;;  %v3140_v7 = vld [vmem:[%s5182_s3 + $0x448] sm:$0xf]  ;;  %v3522_v8 = vld [vmem:[%s5182_s3 + $0x454] sm:$0xf0] }
  0xed   :  { %v713_v30 = vmax.f32 %v702_v20, 0.0  ;;  %1784 = vmatpush.bf16.msrb.mxu1 %v3013_v21  ;;  %v2646_v20 = vld [vmem:[%s5182_s3 + $0x78] sm:$0xf0]  ;;  %v3464_v21 = vld [vmem:[%s5182_s3 + $0x28c] sm:$0xf]  ;;  %v2777_v24 = vor.u32 %v3428_v15, %v2774_v16  ;;  %v3141_v15 = vor.u32 %v3522_v8, %v3140_v7 }
  0xee   :  { %v2649_v26 = vor.u32 %v3396_v19, %v2646_v20  ;;  %v3158_v63 = vld [vmem:[%s5182_s3 + $0x478] sm:$0xf0]  ;;  %v3518_v19 = vld [vmem:[%s5182_s3 + $0x434] sm:$0xf0] }
  0xef   :  { %v4770_v36 = vpack.c.bf16 %v713_v30, %v708_v29  ;;  %1772 = vmatpush.bf16.msrb.mxu0 %v2853_v25  ;;  %v2628_v25 = vld [vmem:[%s5182_s3 + $0x48] sm:$0xf]  ;;  %v2758_v29 = vld [vmem:[%s5182_s3 + $0x158] sm:$0xf0]  ;;  %v2921_v30 = vor.u32 %v3464_v21, %v2918_v22  ;;  %v3516_v21 = vld [vmem:[%s5182_s3 + $0x42c] sm:$0xf] }
  0xf0   :  { %v3126_v22 = vld [vmem:[%s5182_s3 + $0x438] sm:$0xf0] }
  0xf1   :  { %3162 = vmatmul.msk.bf16.vlgmr.msrb.gmra.mxu2 %vm1593_vm0, %v4770_v36  ;;  %3163 = vmatmul.msk.bf16.vlgmr.msra.gmra.mxu3 %vm1593_vm0, %v4770_v36  ;;  %v3078_v34 = vld [vmem:[%s5182_s3 + $0x3d8] sm:$0xf0] }
  0xf2   :  { %1737 = vmatpush.bf16.msrb.mxu2 %v2709_v32  ;;  %1785 = vmatpush.bf16.msrb.mxu1 %v2997_v37  ;;  %v3392_v32 = vld [vmem:[%s5182_s3 + $0x4c] sm:$0xf]  ;;  %v2629_v37 = vor.u32 %v3394_v27, %v2628_v25  ;;  %v3129_v25 = vor.u32 %v3516_v21, %v3126_v22 }
  0xf3   :  { %1821 = vmatpush.bf16.msra.mxu0 %v2841_v33  ;;  %1807 = vmatpush.bf16.msra.mxu3 %v2713_v38  ;;  %v2630_v33 = vld [vmem:[%s5182_s3 + $0x58] sm:$0xf0]  ;;  %v2761_v38 = vor.u32 %v3424_v28, %v2758_v29  ;;  %v3512_v27 = vld [vmem:[%s5182_s3 + $0x40c] sm:$0xf] }
  0xf4   :  { %1773 = vmatmul.bf16.vlgmr.msrb.gmra.mxu0 %v4623_v9  ;;  %v2633_v40 = vor.u32 %v3392_v32, %v2630_v33  ;;  %v3110_v28 = vld [vmem:[%s5182_s3 + $0x418] sm:$0xf0]  ;;  %v3504_v33 = vld [vmem:[%s5182_s3 + $0x3cc] sm:$0xf] }
  0xf5   :  { %v3113_v32 = vor.u32 %v3512_v27, %v3110_v28  ;;  %v3081_v35 = vor.u32 %v3504_v33, %v3078_v34 }
  0xf6   :  { %1738 = vmatpush.bf16.msrb.mxu2 %v2693_v47  ;;  %1786 = vmatpush.bf16.msrb.mxu1 %v2981_v49  ;;  %v3456_v47 = vld [vmem:[%s5182_s3 + $0x24c] sm:$0xf]  ;;  %v2745_v49 = vor.u32 %v3420_v42, %v2742_v43  ;;  %v3030_v43 = vld [vmem:[%s5182_s3 + $0x378] sm:$0xf0] }
  0xf7   :  { %1822 = vmatpush.bf16.msra.mxu0 %v2825_v50  ;;  %1808 = vmatpush.bf16.msra.mxu3 %v2697_v57  ;;  %v2886_v50 = vld [vmem:[%s5182_s3 + $0x258] sm:$0xf0]  ;;  %v2596_v57 = vld [vmem:[%s5182_s3 + $0x8] sm:$0xf]  ;;  %v3492_v42 = vld [vmem:[%s5182_s3 + $0x36c] sm:$0xf] }
  0xf8   :  { %v2889_v58 = vor.u32 %v3456_v47, %v2886_v50  ;;  %v2597_v2 = vor.u32 %v3386_v51, %v2596_v57  ;;  %v3484_v47 = vld [vmem:[%s5182_s3 + $0x32c] sm:$0xf]  ;;  %v2998_v50 = vld [vmem:[%s5182_s3 + $0x338] sm:$0xf0] }
  0xf9   :  { %1787 = vmatmul.bf16.vlgmr.msrb.gmra.mxu1 %v4656_v31  ;;  %v2982_v57 = vld [vmem:[%s5182_s3 + $0x318] sm:$0xf0] }
  0xfa   :  { %1835 = vmatpush.bf16.msra.mxu1 %v2969_v54  ;;  %1739 = vmatpush.bf16.msrb.mxu2 %v2677_v60  ;;  %v2726_v54 = vld [vmem:[%s5182_s3 + $0x118] sm:$0xf0] }
  0xfb   :  { %1823 = vmatpush.bf16.msra.mxu0 %v2809_v0  ;;  %1809 = vmatpush.bf16.msra.mxu3 %v2681_v62  ;;  %v2598_v60 = vld [vmem:[%s5182_s3 + $0x18] sm:$0xf0]  ;;  %v3452_v0 = vld [vmem:[%s5182_s3 + $0x22c] sm:$0xf]  ;;  %v2729_v3 = vor.u32 %v3416_v52, %v2726_v54 }
  0xfc   :  { %v3524_v62 = vld [vmem:[%s5182_s3 + $0x46c] sm:$0xf]  ;;  %v2601_v5 = vor.u32 %v3384_v59, %v2598_v60  ;;  %v2873_v6 = vor.u32 %v3452_v0, %v2870_v61  ;;  %v3534_v52 = vld [vmem:[%s5184_s5 + $0x38] sm:$0xff]  ;;  %v3541_v0 = vld [vmem:[%s5184_s5 + $0x70] sm:$0xff] }
  0xfd   :  { %v3532_v54 = vld [vmem:[%s5184_s5 + $0x28] sm:$0xff]  ;;  %v3527_v61 = vld [vmem:[%s5184_s5] sm:$0xff] }
  0xfe   :  { %1836 = vmatpush.bf16.msra.mxu1 %v2953_v4  ;;  %1740 = vmatpush.bf16.msrb.mxu2 %v2661_v10  ;;  %v3157_v4 = vor.u32 %v3526_v56, %v3156_v55  ;;  %v3161_v10 = vor.u32 %v3524_v62, %v3158_v63  ;;  %v3531_v55 = vld [vmem:[%s5184_s5 + $0x20] sm:$0xff]  ;;  %v3529_v56 = vld [vmem:[%s5184_s5 + $0x10] sm:$0xff]  ;;  %v3528_v59 = vld [vmem:[%s5184_s5 + $0x8] sm:$0xff] }
  0xff   :  { %1824 = vmatpush.bf16.msra.mxu0 %v2793_v11  ;;  %1810 = vmatpush.bf16.msra.mxu3 %v2665_v13  ;;  %v3448_v11 = vld [vmem:[%s5182_s3 + $0x20c] sm:$0xf] }
 0x100   :  { %v3520_v13 = vld [vmem:[%s5182_s3 + $0x44c] sm:$0xf]  ;;  %v2857_v16 = vor.u32 %v3448_v11, %v2854_v12 }
 0x101   :  { %1689 = vmatmul.bf16.vlgmr.msra.gmra.mxu2 %v4542_v17  ;;  %1759 = vmatmul.bf16.vlgmr.msrb.gmra.mxu3 %v4542_v17  ;;  %v3145_v20 = vor.u32 %v3520_v13, %v3142_v14  ;;  %v3540_v62 = vld [vmem:[%s5184_s5 + $0x68] sm:$0xff] }
 0x102   :  { %1837 = vmatpush.bf16.msra.mxu1 %v2937_v18  ;;  %1741 = vmatpush.bf16.msrb.mxu2 %v2645_v23  ;;  %v3124_v18 = vld [vmem:[%s5182_s3 + $0x428] sm:$0xf] }
 0x103   :  { %1825 = vmatpush.bf16.msra.mxu0 %v2777_v24  ;;  %1811 = vmatpush.bf16.msra.mxu3 %v2649_v26  ;;  %v3125_v23 = vor.u32 %v3518_v19, %v3124_v18  ;;  %v3514_v24 = vld [vmem:[%s5182_s3 + $0x414] sm:$0xf0]  ;;  %v3508_v26 = vld [vmem:[%s5182_s3 + $0x3ec] sm:$0xf] }
 0x104   :  { %v3536_v14 = vld [vmem:[%s5184_s5 + $0x48] sm:$0xff]  ;;  %v3550_v18 = vld [vmem:[%s5184_s5 + $0xb8] sm:$0xff] }
 0x106   :  { %1838 = vmatpush.bf16.msra.mxu1 %v2921_v30  ;;  %1742 = vmatpush.bf16.msrb.mxu2 %v2629_v37  ;;  %v3062_v37 = vld [vmem:[%s5182_s3 + $0x3b8] sm:$0xf0] }
 0x107   :  { %1826 = vmatpush.bf16.msra.mxu0 %v2761_v38  ;;  %1812 = vmatpush.bf16.msra.mxu3 %v2633_v40  ;;  %v3046_v40 = vld [vmem:[%s5182_s3 + $0x398] sm:$0xf0] }
 0x108   :  { %v3049_v41 = vor.u32 %v3496_v39, %v3046_v40  ;;  %v3546_v40 = vld [vmem:[%s5184_s5 + $0x98] sm:$0xff] }
 0x10a   :  { %1839 = vmatpush.bf16.msra.mxu1 %v2905_v44  ;;  %1743 = vmatpush.bf16.msrb.mxu2 %v2613_v48  ;;  %v3033_v44 = vor.u32 %v3492_v42, %v3030_v43  ;;  %v3001_v48 = vor.u32 %v3484_v47, %v2998_v50  ;;  %v3544_v47 = vld [vmem:[%s5184_s5 + $0x88] sm:$0xff] }
 0x10b   :  { %1827 = vmatpush.bf16.msra.mxu0 %v2745_v49  ;;  %1813 = vmatpush.bf16.msra.mxu3 %v2617_v53  ;;  %v3480_v49 = vld [vmem:[%s5182_s3 + $0x30c] sm:$0xf]  ;;  %v3533_v53 = vld [vmem:[%s5184_s5 + $0x30] sm:$0xff] }
 0x10c   :  { %v2985_v51 = vor.u32 %v3480_v49, %v2982_v57 }
 0x10e   :  { %1840 = vmatpush.bf16.msra.mxu1 %v2889_v58  ;;  %1744 = vmatpush.bf16.msrb.mxu2 %v2597_v2  ;;  %v3542_v58 = vld [vmem:[%s5184_s5 + $0x78] sm:$0xff]  ;;  %v3539_v2 = vld [vmem:[%s5184_s5 + $0x60] sm:$0xff] }
 0x10f   :  { %1828 = vmatpush.bf16.msra.mxu0 %v2729_v3  ;;  %1814 = vmatpush.bf16.msra.mxu3 %v2601_v5  ;;  %v3538_v5 = vld [vmem:[%s5184_s5 + $0x58] sm:$0xff] }
 0x111   :  { %1745 = vmatmul.bf16.vlgmr.msrb.gmra.mxu2 %v4515_v1 }
 0x112   :  { %1797 = vmatpush.bf16.msra.mxu2 %v3157_v4  ;;  %1841 = vmatpush.bf16.msra.mxu1 %v2873_v6  ;;  %v5098_v4 = vld [vmem:[%s5183_s4] sm:$0xf] }
 0x113   :  { %1867 = vmatpush.bf16.msrb.mxu3 %v3161_v10  ;;  %1829 = vmatmul.bf16.vlgmr.msra.gmra.mxu0 %v4542_v17  ;;  %v3108_v17 = vld [vmem:[%s5182_s3 + $0x408] sm:$0xf]  ;;  %v865_v6 = vperm.slane %v5098_v4, 0  ;;  %v3537_v10 = vld [vmem:[%s5184_s5 + $0x50] sm:$0xff]  ;;  %v866_v33 = vperm.slane %v5098_v4, 1 }
 0x114   :  { %1815 = vmatmul.bf16.vlgmr.msra.gmra.mxu3 %v4515_v1  ;;  %v3094_v1 = vld [vmem:[%s5182_s3 + $0x3f8] sm:$0xf0]  ;;  %v3109_v29 = vor.u32 %v3514_v24, %v3108_v17  ;;  %2149 = vmatpush.bf16.msrb.mxu0 %v3534_v52  ;;  %v3549_v17 = vld [vmem:[%s5184_s5 + $0xb0] sm:$0xff] }
 0x115   :  { %v3097_v30 = vor.u32 %v3508_v26, %v3094_v1  ;;  %v3558_v52 = vld [vmem:[%s5184_s5 + $0xf8] sm:$0xff] }
 0x116   :  { %1798 = vmatpush.bf16.msra.mxu2 %v3141_v15  ;;  %1842 = vmatpush.bf16.msra.mxu1 %v2857_v16 }
 0x117   :  { %1868 = vmatpush.bf16.msrb.mxu3 %v3145_v20  ;;  %v3535_v20 = vld [vmem:[%s5184_s5 + $0x40] sm:$0xff] }
 0x118   :  { %2150 = vmatpush.bf16.msrb.mxu0 %v3533_v53 }
 0x119   :  { %1843 = vmatmul.bf16.vlgmr.msra.gmra.mxu1 %v4623_v9  ;;  %v3500_v9 = vld [vmem:[%s5182_s3 + $0x3ac] sm:$0xf] }
 0x11a   :  { %1799 = vmatpush.bf16.msra.mxu2 %v3125_v23  ;;  %v3065_v38 = vor.u32 %v3500_v9, %v3062_v37  ;;  %2163 = vmatpush.bf16.msrb.mxu1 %v3542_v58  ;;  %v3547_v9 = vld [vmem:[%s5184_s5 + $0xa0] sm:$0xff]  ;;  %v3557_v58 = vld [vmem:[%s5184_s5 + $0xf0] sm:$0xff] }
 0x11b   :  { %1869 = vmatpush.bf16.msrb.mxu3 %v3129_v25 }
 0x11c   :  { %2151 = vmatpush.bf16.msrb.mxu0 %v3532_v54  ;;  %v3543_v54 = vld [vmem:[%s5184_s5 + $0x80] sm:$0xff] }
 0x11e   :  { %1800 = vmatpush.bf16.msra.mxu2 %v3109_v29  ;;  %2164 = vmatpush.bf16.msrb.mxu1 %v3541_v0  ;;  %v3548_v29 = vld [vmem:[%s5184_s5 + $0xa8] sm:$0xff] }
 0x11f   :  { %1870 = vmatpush.bf16.msrb.mxu3 %v3113_v32  ;;  %v3556_v0 = vld [vmem:[%s5184_s5 + $0xe8] sm:$0xff] }
 0x120   :  { %2152 = vmatpush.bf16.msrb.mxu0 %v3531_v55 }
 0x121   :  { %3164 = vmatmul.msk.bf16.vlgmr.msra.gmra.mxu2 %vm1593_vm0, %v4770_v36 }
 0x122   :  { %1849 = vmatpush.bf16.msrb.mxu2 %v3097_v30  ;;  %2165 = vmatpush.bf16.msrb.mxu1 %v3540_v62 }
 0x123   :  { %2191 = vmatpush.bf16.msra.mxu3 %v3558_v52 }
 0x124   :  { %3165 = vmatmul.msk.bf16.vlgmr.msrb.gmra.mxu3 %vm1593_vm0, %v4770_v36  ;;  %v3014_v36 = vld [vmem:[%s5182_s3 + $0x358] sm:$0xf0] }
 0x125   :  { %v3017_v46 = vor.u32 %v3488_v45, %v3014_v36  ;;  %v3545_v45 = vld [vmem:[%s5184_s5 + $0x90] sm:$0xff] }
 0x126   :  { %1850 = vmatpush.bf16.msrb.mxu2 %v3081_v35  ;;  %2166 = vmatpush.bf16.msrb.mxu1 %v3539_v2 }
 0x127   :  { %2192 = vmatpush.bf16.msra.mxu3 %v3557_v58  ;;  %v3564_v58 = vld [vmem:[%s5185_s6] ss:$0 sm:$0xff] }
 0x12a   :  { %1851 = vmatpush.bf16.msrb.mxu2 %v3065_v38  ;;  %2167 = vmatpush.bf16.msrb.mxu1 %v3538_v5  ;;  %v867_v5 = vperm.slane %v5098_v4, 2 }
 0x12b   :  { %2193 = vmatpush.bf16.msra.mxu3 %v3556_v0 }
 0x12e   :  { %1852 = vmatpush.bf16.msrb.mxu2 %v3049_v41  ;;  %2168 = vmatpush.bf16.msrb.mxu1 %v3537_v10  ;;  %v3554_v10 = vld [vmem:[%s5184_s5 + $0xd8] sm:$0xff] }
 0x132   :  { %1853 = vmatpush.bf16.msrb.mxu2 %v3033_v44  ;;  %2169 = vmatpush.bf16.msrb.mxu1 %v3536_v14 }
 0x135   :  { %v1606_v63 = vpop.f32.mrf.mxu2 }
 0x136   :  { %1854 = vmatpush.bf16.msrb.mxu2 %v3017_v46  ;;  %v1607_v12 = vadd.f32 %v1606_v63, %v865_v6  ;;  %2170 = vmatpush.bf16.msrb.mxu1 %v3535_v20 }
 0x13a   :  { %1855 = vmatpush.bf16.msrb.mxu2 %v3001_v48 }
 0x13c   :  { %v1620_v60 = vpop.f32.mrf.mxu3 }
 0x13d   :  { %v1608_v7 = vpop.f32.mrf.mxu2  ;;  %v1621_v16 = vadd.f32 %v1620_v60, %v1607_v12 }
 0x13e   :  { %1856 = vmatpush.bf16.msrb.mxu2 %v2985_v51  ;;  %v1609_v15 = vadd.f32 %v1608_v7, %v865_v6 }
 0x141   :  { %1857 = vmatmul.bf16.vlgmr.msrb.gmra.mxu2 %v4656_v31  ;;  %v3530_v31 = vld [vmem:[%s5184_s5 + $0x18] sm:$0xff] }
 0x142   :  { %2153 = vmatpush.bf16.msrb.mxu0 %v3530_v31  ;;  %2177 = vmatpush.bf16.msra.mxu2 %v3550_v18 }
 0x144   :  { %v1622_v3 = vpop.f32.mrf.mxu3 }
 0x145   :  { %v1623_v23 = vadd.f32 %v1622_v3, %v1609_v15  ;;  %v3555_v3 = vld [vmem:[%s5184_s5 + $0xe0] sm:$0xff]  ;;  %v3553_v15 = vld [vmem:[%s5184_s5 + $0xd0] sm:$0xff] }
 0x146   :  { %2154 = vmatpush.bf16.msrb.mxu0 %v3529_v56  ;;  %2178 = vmatpush.bf16.msra.mxu2 %v3549_v17 }
 0x147   :  { %2194 = vmatpush.bf16.msra.mxu3 %v3555_v3 }
 0x14a   :  { %2155 = vmatpush.bf16.msrb.mxu0 %v3528_v59  ;;  %2179 = vmatpush.bf16.msra.mxu2 %v3548_v29 }
 0x14b   :  { %2195 = vmatpush.bf16.msra.mxu3 %v3554_v10 }
 0x14c   :  { %v1676_v13 = vpop.f32.mrf.mxu3 }
 0x14d   :  { %v1677_v39 = vadd.f32 %v1676_v13, %v866_v33 }
 0x14e   :  { %2156 = vmatpush.bf16.msrb.mxu0 %v3527_v61  ;;  %2180 = vmatpush.bf16.msra.mxu2 %v3547_v9 }
 0x14f   :  { %v1634_v8 = vpop.f32.mrf.mxu0  ;;  %2196 = vmatpush.bf16.msra.mxu3 %v3553_v15 }
 0x150   :  { %v1635_v22 = vadd.f32 %v1634_v8, %v1621_v16 }
 0x152   :  { %2181 = vmatpush.bf16.msra.mxu2 %v3546_v40 }
 0x154   :  { %v1678_v1 = vpop.f32.mrf.mxu3 }
 0x155   :  { %v1648_v11 = vpop.f32.mrf.mxu1  ;;  %v1679_v46 = vadd.f32 %v1678_v1, %v866_v33 }
 0x156   :  { %v1649_v25 = vadd.f32 %v1648_v11, %v1635_v22  ;;  %2182 = vmatpush.bf16.msra.mxu2 %v3545_v45 }
 0x157   :  { %v1636_v21 = vpop.f32.mrf.mxu0 }
 0x158   :  { %v1637_v26 = vadd.f32 %v1636_v21, %v1623_v23  ;;  %v3552_v21 = vld [vmem:[%s5184_s5 + $0xc8] sm:$0xff] }
 0x159   :  { %2197 = vmatpush.bf16.msra.mxu3 %v3552_v21 }
 0x15a   :  { %2183 = vmatpush.bf16.msra.mxu2 %v3544_v47 }
 0x15d   :  { %v1650_v24 = vpop.f32.mrf.mxu1 }
 0x15e   :  { %v1651_v27 = vadd.f32 %v1650_v24, %v1637_v26  ;;  %2184 = vmatpush.bf16.msra.mxu2 %v3543_v54  ;;  %v3559_v54 = vld [vmem:[%s5186_s7] sm:$0xff] }
 0x15f   :  { %v1704_v41 = vpop.f32.mrf.mxu0 }
 0x165   :  { %v1718_v44 = vpop.f32.mrf.mxu1 }
 0x167   :  { %v1706_v51 = vpop.f32.mrf.mxu0 }
 0x16d   :  { %v1720_v55 = vpop.f32.mrf.mxu1 }
 0x171   :  { %v1774_v6 = vpop.f32.mrf.mxu0 }
 0x174   :  { %v1662_v19 = vpop.f32.mrf.mxu2  ;;  %v1732_v38 = vpop.f32.mrf.mxu3 }
 0x175   :  { %v1663_v28 = vadd.f32 %v1662_v19, %v1649_v25  ;;  %v3551_v25 = vld [vmem:[%s5184_s5 + $0xc0] sm:$0xff] }
 0x176   :  { %v1788_v12 = vpop.f32.mrf.mxu1  ;;  %2198 = vmatpush.bf16.msra.mxu3 %v3551_v25 }
 0x177   :  { %v1877_v34 = vmax.f32 %v1663_v28, 0.0 }
 0x179   :  { %v1776_v20 = vpop.f32.mrf.mxu0 }
 0x17c   :  { %v1664_v30 = vpop.f32.mrf.mxu2  ;;  %v1734_v50 = vpop.f32.mrf.mxu3 }
 0x17d   :  { %v1665_v32 = vadd.f32 %v1664_v30, %v1651_v27 }
 0x17e   :  { %v1790_v17 = vpop.f32.mrf.mxu1 }
 0x17f   :  { %v1881_v35 = vmax.f32 %v1665_v32, 0.0 }
 0x181   :  { %v1885_v37 = vpack.c.bf16 %v1881_v35, %v1877_v34  ;;  %v868_v34 = vperm.slane %v5098_v4, 3 }
 0x183   :  { %2157 = vmatmul.bf16.vlgmr.msrb.gmra.mxu0 %v1885_v37 }
 0x184   :  { %v1690_v42 = vpop.f32.mrf.mxu2  ;;  %v1760_v63 = vpop.f32.mrf.mxu3 }
 0x185   :  { %v1691_v43 = vadd.f32 %v1690_v42, %v1677_v39 }
 0x187   :  { %v1705_v36 = vadd.f32 %v1704_v41, %v1691_v43 }
 0x189   :  { %v1719_v49 = vadd.f32 %v1718_v44, %v1705_v36 }
 0x18b   :  { %v1733_v31 = vadd.f32 %v1732_v38, %v1719_v49 }
 0x18c   :  { %v1692_v48 = vpop.f32.mrf.mxu2  ;;  %v1762_v13 = vpop.f32.mrf.mxu3 }
 0x18d   :  { %v1693_v57 = vadd.f32 %v1692_v48, %v1679_v46  ;;  %v1878_v61 = vmax.f32 %v1733_v31, 0.0 }
 0x18f   :  { %v1707_v53 = vadd.f32 %v1706_v51, %v1693_v57 }
 0x190   :  { %v1830_v35 = vpop.f32.mrf.mxu0 }
 0x191   :  { %v1721_v56 = vadd.f32 %v1720_v55, %v1707_v53  ;;  %v3560_v53 = vld [vmem:[%s5186_s7 + $0x8] sm:$0xff] }
 0x192   :  { %2238 = vmatpush.bf16.msra.mxu0 %v3560_v53 }
 0x193   :  { %v1735_v59 = vadd.f32 %v1734_v50, %v1721_v56 }
 0x194   :  { %v1746_v60 = vpop.f32.mrf.mxu2 }
 0x195   :  { %v1882_v62 = vmax.f32 %v1735_v59, 0.0  ;;  %v1747_v8 = vadd.f32 %v1746_v60, %v867_v5 }
 0x196   :  { %v1844_v37 = vpop.f32.mrf.mxu1  ;;  %2239 = vmatpush.bf16.msra.mxu0 %v3559_v54 }
 0x197   :  { %v1886_v2 = vpack.c.bf16 %v1882_v62, %v1878_v61  ;;  %v1761_v14 = vadd.f32 %v1760_v63, %v1747_v8  ;;  %v1816_v24 = vpop.f32.mrf.mxu3 }
 0x198   :  { %v1817_v9 = vadd.f32 %v1816_v24, %v868_v34  ;;  %v1832_v42 = vpop.f32.mrf.mxu0 }
 0x199   :  { %2171 = vmatmul.bf16.vlgmr.msrb.gmra.mxu1 %v1886_v2  ;;  %v1775_v19 = vadd.f32 %v1774_v6, %v1761_v14  ;;  %v3565_v14 = vld [vmem:[%s5187_s8] ss:$0 sm:$0xff] }
 0x19a   :  { %v1831_v38 = vadd.f32 %v1830_v35, %v1817_v9 }
 0x19b   :  { %v1789_v23 = vadd.f32 %v1788_v12, %v1775_v19 }
 0x19c   :  { %v1748_v7 = vpop.f32.mrf.mxu2  ;;  %v1845_v44 = vadd.f32 %v1844_v37, %v1831_v38 }
 0x19d   :  { %v1749_v11 = vadd.f32 %v1748_v7, %v867_v5 }
 0x19e   :  { %v1846_v36 = vpop.f32.mrf.mxu1 }
 0x19f   :  { %v1763_v16 = vadd.f32 %v1762_v13, %v1749_v11  ;;  %v1818_v33 = vpop.f32.mrf.mxu3 }
 0x1a0   :  { %v1819_v39 = vadd.f32 %v1818_v33, %v868_v34 }
 0x1a1   :  { %v1777_v22 = vadd.f32 %v1776_v20, %v1763_v16 }
 0x1a2   :  { %v1833_v43 = vadd.f32 %v1832_v42, %v1819_v39 }
 0x1a3   :  { %v1791_v1 = vadd.f32 %v1790_v17, %v1777_v22 }
 0x1a4   :  { %v1802_v18 = vpop.f32.mrf.mxu2  ;;  %v1847_v46 = vadd.f32 %v1846_v36, %v1833_v43 }
 0x1a5   :  { %v1803_v26 = vadd.f32 %v1802_v18, %v1789_v23 }
 0x1a7   :  { %v1879_v29 = vmax.f32 %v1803_v26, 0.0  ;;  %v1872_v40 = vpop.f32.mrf.mxu3 }
 0x1ac   :  { %v1804_v27 = vpop.f32.mrf.mxu2 }
 0x1ad   :  { %v1805_v28 = vadd.f32 %v1804_v27, %v1791_v1 }
 0x1af   :  { %v1883_v30 = vmax.f32 %v1805_v28, 0.0  ;;  %v1874_v49 = vpop.f32.mrf.mxu3 }
 0x1b1   :  { %v1887_v32 = vpack.c.bf16 %v1883_v30, %v1879_v29 }
 0x1b3   :  { %2185 = vmatmul.bf16.vlgmr.msra.gmra.mxu2 %v1887_v32 }
 0x1c4   :  { %v1858_v41 = vpop.f32.mrf.mxu2 }
 0x1c5   :  { %v1859_v45 = vadd.f32 %v1858_v41, %v1845_v44 }
 0x1c7   :  { %v1873_v50 = vadd.f32 %v1872_v40, %v1859_v45 }
 0x1c9   :  { %v1880_v51 = vmax.f32 %v1873_v50, 0.0 }
 0x1cc   :  { %v1860_v47 = vpop.f32.mrf.mxu2 }
 0x1cd   :  { %v1861_v48 = vadd.f32 %v1860_v47, %v1847_v46 }
 0x1cf   :  { %v1875_v57 = vadd.f32 %v1874_v49, %v1861_v48 }
 0x1d1   :  { %v1884_v4 = vmax.f32 %v1875_v57, 0.0 }
 0x1d3   :  { %v1888_v52 = vpack.c.bf16 %v1884_v4, %v1880_v51 }
 0x1d5   :  { %2199 = vmatmul.bf16.vlgmr.msra.gmra.mxu3 %v1888_v52 }
 0x200   :  { %v2158_v55 = vpop.f32.mrf.mxu0 }
 0x201   :  { %v2159_v0 = vadd.f32 %v3564_v58, %v2158_v55 }
 0x208   :  { %v2160_v59 = vpop.f32.mrf.mxu0 }
 0x209   :  { %v2161_v62 = vadd.f32 %v3564_v58, %v2160_v59 }
 0x216   :  { %v2172_v31 = vpop.f32.mrf.mxu1 }
 0x217   :  { %v2173_v63 = vadd.f32 %v2172_v31, %v2159_v0 }
 0x21e   :  { %v2174_v61 = vpop.f32.mrf.mxu1 }
 0x21f   :  { %v2175_v3 = vadd.f32 %v2174_v61, %v2161_v62 }
 0x236   :  { %v2186_v56 = vpop.f32.mrf.mxu2 }
 0x237   :  { %v2187_v5 = vadd.f32 %v2186_v56, %v2173_v63 }
 0x23e   :  { %v2188_v2 = vpop.f32.mrf.mxu2 }
 0x23f   :  { %v2189_v6 = vadd.f32 %v2188_v2, %v2175_v3 }
 0x258   :  { %v2200_v60 = vpop.f32.mrf.mxu3 }
 0x259   :  { %v2201_v7 = vadd.f32 %v2200_v60, %v2187_v5 }
 0x25b   :  { %v2205_v11 = vmax.f32 %v2201_v7, 0.0 }
 0x260   :  { %v2202_v8 = vpop.f32.mrf.mxu3 }
 0x261   :  { %v2203_v10 = vadd.f32 %v2202_v8, %v2189_v6 }
 0x263   :  { %v2206_v12 = vmax.f32 %v2203_v10, 0.0 }
 0x265   :  { %v2207_v13 = vpack.c.bf16 %v2206_v12, %v2205_v11 }
 0x267   :  { %3302 = vmatmul.msk.bf16.vlgmr.msra.gmra.mxu0 %vm2228_vm1, %v2207_v13 }
 0x2e4   :  { %v2241_v15 = vpop.f32.mrf.mxu0 }
 0x2e5   :  { %v2242_v16 = vadd.f32 %v3565_v14, %v2241_v15 }
 0x2e7   :  { %2246 = vst [vmem:[#allocation2] sm:$0xff] %v2242_v16 }
 0x2ec   :  { %v2243_v18 = vpop.f32.mrf.mxu0 }
 0x2ed   :  { %v2244_v19 = vadd.f32 %v3565_v14, %v2243_v18 }
 0x2ef   :  { %2247 = vst [vmem:[#allocation2 + $0x8] sm:$0xff] %v2244_v19 }
 0x2f0   :  { %2260 = dma.vmem_to_hbm [thread:$0]  %s2253_s19, 256, %s2255_s21, [#allocation3], %s3593_s22, %s3593_s22, %s3594_s23  }
 0x2f1   :  { %3590 = dma.done.wait [#allocation3], 256  }
 0x2f2   :  { %3591 = vsyncadd [#allocation3], 4294967040 }
 0x2f3   :  { %2265 = vsyncpa [#allocation3], 1 }

</bundles_post_ra>
